<compile_context>
chip_gen: v7x
topology: tpu7x:2x2x1
jax: 0.10.0
libtpu: 0.0.40
codegen_flags: <defaults>
</compile_context>

<pallas_src>
import functools

import jax
import jax.numpy as jnp
from jax.experimental import pallas as pl
from jax.experimental.pallas import tpu as pltpu

HIDDEN_SIZES = (1024, 512, 256, 128)
NUM_ACTIONS = 2
INITIAL_STD = 0.4
ACTION_MIN = -1.0   # action_min / action_max are external globals in the
ACTION_MAX = 1.0    # reference script; fixed deterministically here.

_SINGLE_STEP_MAX = 511   # B < 512 -> one grid step (weight-DMA bound regime)


def _round_up(v, m):
    return ((v + m - 1) // m) * m


def _default_relu_in_bf16():
    """bf16 VPU epilogue only helps on v6e/v7x; older generations keep f32."""
    try:
        kind = jax.devices()[0].device_kind.lower()
    except Exception:
        return True
    return not any(g in kind for g in ("v2", "v3", "v4", "v5"))


def _mlp_kernel(x_ref,
                w1_ref, b1_ref, w2_ref, b2_ref, w3_ref, b3_ref,
                w4_ref, b4_ref, w5_ref, b5_ref,
                mean_ref, *, action_min, action_max, relu_in_bf16):
    """Fused 5-layer MLP + tanh + action rescale.  One batch tile per grid step.

    Activations/weights are bf16; every matmul accumulates in f32 on the MXU,
    bias-add happens in f32, ReLU happens in bf16 (v6e/v7x) or f32 (v5e),
    and the activation is carried forward in bf16.
    """

    def layer(h, w_ref, b_ref):
        # bf16 x bf16 -> f32 accumulate on the MXU, f32 bias add.
        return jnp.dot(h, w_ref[...], preferred_element_type=jnp.float32) + b_ref[...]

    def relu_to_bf16(acc_f32):
        if relu_in_bf16:
            # cast first, ReLU on half the VALU work (relu∘cast == cast∘relu).
            return jnp.maximum(acc_f32.astype(jnp.bfloat16), 0.0)
        return jnp.maximum(acc_f32, 0.0).astype(jnp.bfloat16)

    h = x_ref[...].astype(jnp.bfloat16)            # in-kernel f32 -> bf16 cast
    h = relu_to_bf16(layer(h, w1_ref, b1_ref))
    h = relu_to_bf16(layer(h, w2_ref, b2_ref))
    h = relu_to_bf16(layer(h, w3_ref, b3_ref))
    h = relu_to_bf16(layer(h, w4_ref, b4_ref))
    t = jnp.tanh(layer(h, w5_ref, b5_ref))         # f32, EUP

    half_range = 0.5 * (action_max - action_min)
    mean_ref[...] = (action_min + (t + 1.0) * half_range).astype(mean_ref.dtype)


def imitation_nn_forward(x, params, *, batch_tile=512,
                         action_min=ACTION_MIN, action_max=ACTION_MAX,
                         relu_in_bf16=None):
    """Run the Immitation_nn forward pass.

    Args:
      x: (B, in_dim) float32 (cast to bf16 inside the kernel), any B >= 1.
      params: dict with w1..w5 (bf16, (in,out)), b1..b5 (f32, (1,out)),
              logstd (f32, (num_actions,)).
      batch_tile: max rows per grid step for large batches (rounded to 16).
      relu_in_bf16: None -> auto-select by TPU generation.

    Returns:
      (action_mean (B, num_actions) f32, action_stddev (num_actions,) f32)
    """
    B, in_dim = x.shape
    na = params["w5"].shape[1]
    h1, h2, h3, h4 = HIDDEN_SIZES

    if relu_in_bf16 is None:
        relu_in_bf16 = _default_relu_in_bf16()
    batch_tile = max(16, _round_up(batch_tile, 16))

    if B <= _SINGLE_STEP_MAX:
        # Small / weight-DMA-bound batch: one grid step for the whole batch —
        # weights DMA'd once, zero per-step pipeline overhead, no TC split.
        tile = max(16, _round_up(B, 16))
    else:
        # Compute-bound batch: guarantee >= 2 grid steps so the "parallel"
        # batch axis shards across v7x's two TensorCores, capped at batch_tile.
        tile = min(batch_tile, _round_up(pl.cdiv(B, 2), 16))

    xi = x
    b_io = B
    if tile > B:
        # Only the tiny single-tile case pads (<= 15 zero rows); the
        # large-batch ragged last block is handled by Pallas directly.
        xi = jnp.pad(x, ((0, tile - B), (0, 0)))
        b_io = tile

    grid = (pl.cdiv(b_io, tile),)

    # Replicated (weight-like) operands: full-array block, fixed index_map.
    def _rep(shape):
        return pl.BlockSpec(shape, lambda i: (0,) * len(shape))

    in_specs = [
        pl.BlockSpec((tile, in_dim), lambda i: (i, 0)),  # x (f32)
        _rep((in_dim, h1)), _rep((1, h1)),
        _rep((h1, h2)),     _rep((1, h2)),
        _rep((h2, h3)),     _rep((1, h3)),
        _rep((h3, h4)),     _rep((1, h4)),
        _rep((h4, na)),     _rep((1, na)),
    ]
    out_specs = pl.BlockSpec((tile, na), lambda i: (i, 0))
    out_shape = jax.ShapeDtypeStruct((b_io, na), jnp.float32)

    kernel = functools.partial(
        _mlp_kernel,
        action_min=float(action_min),
        action_max=float(action_max),
        relu_in_bf16=bool(relu_in_bf16),
    )

    mean = pl.pallas_call(
        kernel,
        grid_spec=pltpu.PrefetchScalarGridSpec(
            num_scalar_prefetch=0,
            grid=grid,
            in_specs=in_specs,
            out_specs=out_specs,
        ),
        out_shape=out_shape,
        compiler_params=pltpu.CompilerParams(
            # Batch tiles are independent -> shard across v7x's 2 TensorCores.
            dimension_semantics=("parallel",),
            # Actual footprint is a few MiB; keep headroom under v7x's 64 MiB.
            vmem_limit_bytes=32 << 20,
        ),
    )(
        xi,
        params["w1"], params["b1"],
        params["w2"], params["b2"],
        params["w3"], params["b3"],
        params["w4"], params["b4"],
        params["w5"], params["b5"],
    )

    if b_io != B:
        mean = mean[:B]

    # action_stddev is a per-action constant — plain JAX, no per-step writeback.
    action_stddev = jnp.exp(params["logstd"])
    return mean, action_stddev


def init_params(key, in_dim, num_actions=NUM_ACTIONS):
    """Deterministic synthetic parameter init (shapes match the PyTorch module)."""
    dims = (in_dim,) + HIDDEN_SIZES + (num_actions,)
    params = {}
    keys = jax.random.split(key, len(dims) - 1)
    for li, (fan_in, fan_out) in enumerate(zip(dims[:-1], dims[1:]), start=1):
        kw, kb = jax.random.split(keys[li - 1])
        bound = 1.0 / jnp.sqrt(fan_in)
        w = jax.random.uniform(kw, (fan_in, fan_out), jnp.float32, -bound, bound)
        b = jax.random.uniform(kb, (1, fan_out), jnp.float32, -bound, bound)
        params[f"w{li}"] = w.astype(jnp.bfloat16)   # bf16 weights (MXU-native)
        params[f"b{li}"] = b                        # f32 biases (f32 accumulate)
    params["logstd"] = jnp.full((num_actions,), jnp.log(INITIAL_STD), jnp.float32)
    return params


def reference_forward(x, params, *, action_min=ACTION_MIN, action_max=ACTION_MAX):
    """Pure-JAX reference replicating the kernel numerics (bf16 w / f32 acc).

    Note: bf16 weights/activations deviate from a pure-f32 PyTorch module at
    ~1e-2 relative level; this reference mirrors the kernel's numerics exactly.
    """
    h = x.astype(jnp.bfloat16)
    for li in range(1, 5):
        acc = jnp.dot(h, params[f"w{li}"],
                      preferred_element_type=jnp.float32) + params[f"b{li}"]
        h = jnp.maximum(acc, 0.0).astype(jnp.bfloat16)
    acc = jnp.dot(h, params["w5"],
                  preferred_element_type=jnp.float32) + params["b5"]
    t = jnp.tanh(acc)
    mean = action_min + (t + 1.0) * 0.5 * (action_max - action_min)
    std = jnp.exp(params["logstd"])
    return mean, std


if __name__ == "__main__":
    key = jax.random.PRNGKey(0)
    k_param, k_x = jax.random.split(key)

    IN_DIM = 64
    params = init_params(k_param, IN_DIM)
    fwd = jax.jit(imitation_nn_forward)

    # Case 1: small aligned batch -> single grid step.
    x16 = jax.random.normal(jax.random.fold_in(k_x, 0), (16, IN_DIM), jnp.float32)
    m16, s16 = fwd(x16, params)
    jax.block_until_ready((m16, s16))
    rm16, rs16 = reference_forward(x16, params)
    assert m16.shape == (16, NUM_ACTIONS)
    assert s16.shape == (NUM_ACTIONS,)
    assert jnp.allclose(m16, rm16, atol=5e-3, rtol=5e-3)
    assert jnp.allclose(s16, rs16, atol=1e-6)

    # Case 2: ragged tiny batch -> padded to one 16-row tile, output sliced.
    x10 = jax.random.normal(jax.random.fold_in(k_x, 1), (10, IN_DIM), jnp.float32)
    m10, _ = fwd(x10, params)
    jax.block_until_ready(m10)
    rm10, _ = reference_forward(x10, params)
    assert m10.shape == (10, NUM_ACTIONS)
    assert jnp.allclose(m10, rm10, atol=5e-3, rtol=5e-3)

    # Case 3: multi-step batch (>= 2 grid steps, ragged last block, no pad).
    x520 = jax.random.normal(jax.random.fold_in(k_x, 2), (520, IN_DIM), jnp.float32)
    m520, _ = fwd(x520, params)
    jax.block_until_ready(m520)
    rm520, _ = reference_forward(x520, params)
    assert m520.shape == (520, NUM_ACTIONS)
    assert jnp.allclose(m520, rm520, atol=5e-3, rtol=5e-3)

    print("KERNEL_OK")
</pallas_src>

<mosaic_0001>
module attributes {stable_mosaic.version = 11 : i64} {
  func.func @_mlp_kernel(%arg0: i32, %arg1: memref<16x64xf32, #tpu.memory_space<vmem>>, %arg2: memref<64x1024xbf16, #tpu.memory_space<vmem>>, %arg3: memref<1x1024xf32, #tpu.memory_space<vmem>>, %arg4: memref<1024x512xbf16, #tpu.memory_space<vmem>>, %arg5: memref<1x512xf32, #tpu.memory_space<vmem>>, %arg6: memref<512x256xbf16, #tpu.memory_space<vmem>>, %arg7: memref<1x256xf32, #tpu.memory_space<vmem>>, %arg8: memref<256x128xbf16, #tpu.memory_space<vmem>>, %arg9: memref<1x128xf32, #tpu.memory_space<vmem>>, %arg10: memref<128x2xbf16, #tpu.memory_space<vmem>>, %arg11: memref<1x2xf32, #tpu.memory_space<vmem>>, %arg12: memref<16x2xf32, #tpu.memory_space<vmem>>) attributes {dimension_semantics = [#tpu.dimension_semantics<parallel>], iteration_bounds = array<i64: 1>, scalar_prefetch = 0 : i64, scratch_operands = 0 : i64, tpu.core_type = #tpu.core_type<tc>, window_params = [{transform_indices = @transform_0, window_bounds = array<i64: 16, 64>}, {pipeline_mode = #tpu.pipeline_mode<synchronous>, transform_indices = @transform_1, window_bounds = array<i64: 64, 1024>}, {pipeline_mode = #tpu.pipeline_mode<synchronous>, transform_indices = @transform_2, window_bounds = array<i64: 1, 1024>}, {pipeline_mode = #tpu.pipeline_mode<synchronous>, transform_indices = @transform_3, window_bounds = array<i64: 1024, 512>}, {pipeline_mode = #tpu.pipeline_mode<synchronous>, transform_indices = @transform_4, window_bounds = array<i64: 1, 512>}, {pipeline_mode = #tpu.pipeline_mode<synchronous>, transform_indices = @transform_5, window_bounds = array<i64: 512, 256>}, {pipeline_mode = #tpu.pipeline_mode<synchronous>, transform_indices = @transform_6, window_bounds = array<i64: 1, 256>}, {pipeline_mode = #tpu.pipeline_mode<synchronous>, transform_indices = @transform_7, window_bounds = array<i64: 256, 128>}, {pipeline_mode = #tpu.pipeline_mode<synchronous>, transform_indices = @transform_8, window_bounds = array<i64: 1, 128>}, {pipeline_mode = #tpu.pipeline_mode<synchronous>, transform_indices = @transform_9, window_bounds = array<i64: 128, 2>}, {pipeline_mode = #tpu.pipeline_mode<synchronous>, transform_indices = @transform_10, window_bounds = array<i64: 1, 2>}, {transform_indices = @transform_11, window_bounds = array<i64: 16, 2>}]} {
    %c0 = arith.constant 0 : index
    %c0_0 = arith.constant 0 : index
    %0 = vector.load %arg1[%c0, %c0_0] : memref<16x64xf32, #tpu.memory_space<vmem>>, vector<16x64xf32>
    %1 = arith.truncf %0 : vector<16x64xf32> to vector<16x64xbf16>
    %c0_1 = arith.constant 0 : index
    %c0_2 = arith.constant 0 : index
    %2 = vector.load %arg2[%c0_1, %c0_2] : memref<64x1024xbf16, #tpu.memory_space<vmem>>, vector<64x1024xbf16>
    %cst = arith.constant dense<0.000000e+00> : vector<16x1024xf32>
    %3 = tpu.matmul %1, %2, %cst {dimension_numbers = #tpu.dot_dimension_numbers<[1], [0], [0], [1], [0, 0, 1, 1], [], []>} : vector<16x64xbf16>, vector<64x1024xbf16>, vector<16x1024xf32> -> vector<16x1024xf32>
    %c0_3 = arith.constant 0 : index
    %c0_4 = arith.constant 0 : index
    %4 = vector.load %arg3[%c0_3, %c0_4] : memref<1x1024xf32, #tpu.memory_space<vmem>>, vector<1x1024xf32>
    %5 = vector.broadcast %4 : vector<1x1024xf32> to vector<16x1024xf32>
    %6 = arith.addf %3, %5 : vector<16x1024xf32>
    %7 = arith.truncf %6 : vector<16x1024xf32> to vector<16x1024xbf16>
    %cst_5 = arith.constant 0.000000e+00 : bf16
    %8 = vector.broadcast %cst_5 : bf16 to vector<16x1024xbf16>
    %9 = arith.maximumf %7, %8 : vector<16x1024xbf16>
    %c0_6 = arith.constant 0 : index
    %c0_7 = arith.constant 0 : index
    %10 = vector.load %arg4[%c0_6, %c0_7] : memref<1024x512xbf16, #tpu.memory_space<vmem>>, vector<1024x512xbf16>
    %cst_8 = arith.constant dense<0.000000e+00> : vector<16x512xf32>
    %11 = tpu.matmul %9, %10, %cst_8 {dimension_numbers = #tpu.dot_dimension_numbers<[1], [0], [0], [1], [0, 0, 1, 1], [], []>} : vector<16x1024xbf16>, vector<1024x512xbf16>, vector<16x512xf32> -> vector<16x512xf32>
    %c0_9 = arith.constant 0 : index
    %c0_10 = arith.constant 0 : index
    %12 = vector.load %arg5[%c0_9, %c0_10] : memref<1x512xf32, #tpu.memory_space<vmem>>, vector<1x512xf32>
    %13 = vector.broadcast %12 : vector<1x512xf32> to vector<16x512xf32>
    %14 = arith.addf %11, %13 : vector<16x512xf32>
    %15 = arith.truncf %14 : vector<16x512xf32> to vector<16x512xbf16>
    %cst_11 = arith.constant 0.000000e+00 : bf16
    %16 = vector.broadcast %cst_11 : bf16 to vector<16x512xbf16>
    %17 = arith.maximumf %15, %16 : vector<16x512xbf16>
    %c0_12 = arith.constant 0 : index
    %c0_13 = arith.constant 0 : index
    %18 = vector.load %arg6[%c0_12, %c0_13] : memref<512x256xbf16, #tpu.memory_space<vmem>>, vector<512x256xbf16>
    %cst_14 = arith.constant dense<0.000000e+00> : vector<16x256xf32>
    %19 = tpu.matmul %17, %18, %cst_14 {dimension_numbers = #tpu.dot_dimension_numbers<[1], [0], [0], [1], [0, 0, 1, 1], [], []>} : vector<16x512xbf16>, vector<512x256xbf16>, vector<16x256xf32> -> vector<16x256xf32>
    %c0_15 = arith.constant 0 : index
    %c0_16 = arith.constant 0 : index
    %20 = vector.load %arg7[%c0_15, %c0_16] : memref<1x256xf32, #tpu.memory_space<vmem>>, vector<1x256xf32>
    %21 = vector.broadcast %20 : vector<1x256xf32> to vector<16x256xf32>
    %22 = arith.addf %19, %21 : vector<16x256xf32>
    %23 = arith.truncf %22 : vector<16x256xf32> to vector<16x256xbf16>
    %cst_17 = arith.constant 0.000000e+00 : bf16
    %24 = vector.broadcast %cst_17 : bf16 to vector<16x256xbf16>
    %25 = arith.maximumf %23, %24 : vector<16x256xbf16>
    %c0_18 = arith.constant 0 : index
    %c0_19 = arith.constant 0 : index
    %26 = vector.load %arg8[%c0_18, %c0_19] : memref<256x128xbf16, #tpu.memory_space<vmem>>, vector<256x128xbf16>
    %cst_20 = arith.constant dense<0.000000e+00> : vector<16x128xf32>
    %27 = tpu.matmul %25, %26, %cst_20 {dimension_numbers = #tpu.dot_dimension_numbers<[1], [0], [0], [1], [0, 0, 1, 1], [], []>} : vector<16x256xbf16>, vector<256x128xbf16>, vector<16x128xf32> -> vector<16x128xf32>
    %c0_21 = arith.constant 0 : index
    %c0_22 = arith.constant 0 : index
    %28 = vector.load %arg9[%c0_21, %c0_22] : memref<1x128xf32, #tpu.memory_space<vmem>>, vector<1x128xf32>
    %29 = vector.broadcast %28 : vector<1x128xf32> to vector<16x128xf32>
    %30 = arith.addf %27, %29 : vector<16x128xf32>
    %31 = arith.truncf %30 : vector<16x128xf32> to vector<16x128xbf16>
    %cst_23 = arith.constant 0.000000e+00 : bf16
    %32 = vector.broadcast %cst_23 : bf16 to vector<16x128xbf16>
    %33 = arith.maximumf %31, %32 : vector<16x128xbf16>
    %c0_24 = arith.constant 0 : index
    %c0_25 = arith.constant 0 : index
    %34 = vector.load %arg10[%c0_24, %c0_25] : memref<128x2xbf16, #tpu.memory_space<vmem>>, vector<128x2xbf16>
    %cst_26 = arith.constant dense<0.000000e+00> : vector<16x2xf32>
    %35 = tpu.matmul %33, %34, %cst_26 {dimension_numbers = #tpu.dot_dimension_numbers<[1], [0], [0], [1], [0, 0, 1, 1], [], []>} : vector<16x128xbf16>, vector<128x2xbf16>, vector<16x2xf32> -> vector<16x2xf32>
    %c0_27 = arith.constant 0 : index
    %c0_28 = arith.constant 0 : index
    %36 = vector.load %arg11[%c0_27, %c0_28] : memref<1x2xf32, #tpu.memory_space<vmem>>, vector<1x2xf32>
    %37 = vector.broadcast %36 : vector<1x2xf32> to vector<16x2xf32>
    %38 = arith.addf %35, %37 : vector<16x2xf32>
    %39 = math.tanh %38 : vector<16x2xf32>
    %cst_29 = arith.constant 1.000000e+00 : f32
    %40 = vector.broadcast %cst_29 : f32 to vector<16x2xf32>
    %41 = arith.addf %39, %40 : vector<16x2xf32>
    %cst_30 = arith.constant 1.000000e+00 : f32
    %42 = vector.broadcast %cst_30 : f32 to vector<16x2xf32>
    %43 = arith.mulf %41, %42 : vector<16x2xf32>
    %cst_31 = arith.constant -1.000000e+00 : f32
    %44 = vector.broadcast %cst_31 : f32 to vector<16x2xf32>
    %45 = arith.addf %44, %43 : vector<16x2xf32>
    %c0_32 = arith.constant 0 : index
    %c0_33 = arith.constant 0 : index
    %46 = vector.load %arg12[%c0_32, %c0_33] : memref<16x2xf32, #tpu.memory_space<vmem>>, vector<16x2xf32>
    tpu.vector_store %arg12[%c0_32, %c0_33], %45 {strides = array<i32>} : memref<16x2xf32, #tpu.memory_space<vmem>>, vector<16x2xf32>,
    return
  }
  func.func @transform_0(%arg0: i32) -> (i32, i32) {
    %c0_i32 = arith.constant 0 : i32
    %c0_i32_0 = arith.constant 0 : i32
    return %arg0, %c0_i32 : i32, i32
  }
  func.func @transform_1(%arg0: i32) -> (i32, i32) {
    %c0_i32 = arith.constant 0 : i32
    %c0_i32_0 = arith.constant 0 : i32
    %c0_i32_1 = arith.constant 0 : i32
    return %c0_i32, %c0_i32_0 : i32, i32
  }
  func.func @transform_2(%arg0: i32) -> (i32, i32) {
    %c0_i32 = arith.constant 0 : i32
    %c0_i32_0 = arith.constant 0 : i32
    %c0_i32_1 = arith.constant 0 : i32
    return %c0_i32, %c0_i32_0 : i32, i32
  }
  func.func @transform_3(%arg0: i32) -> (i32, i32) {
    %c0_i32 = arith.constant 0 : i32
    %c0_i32_0 = arith.constant 0 : i32
    %c0_i32_1 = arith.constant 0 : i32
    return %c0_i32, %c0_i32_0 : i32, i32
  }
  func.func @transform_4(%arg0: i32) -> (i32, i32) {
    %c0_i32 = arith.constant 0 : i32
    %c0_i32_0 = arith.constant 0 : i32
    %c0_i32_1 = arith.constant 0 : i32
    return %c0_i32, %c0_i32_0 : i32, i32
  }
  func.func @transform_5(%arg0: i32) -> (i32, i32) {
    %c0_i32 = arith.constant 0 : i32
    %c0_i32_0 = arith.constant 0 : i32
    %c0_i32_1 = arith.constant 0 : i32
    return %c0_i32, %c0_i32_0 : i32, i32
  }
  func.func @transform_6(%arg0: i32) -> (i32, i32) {
    %c0_i32 = arith.constant 0 : i32
    %c0_i32_0 = arith.constant 0 : i32
    %c0_i32_1 = arith.constant 0 : i32
    return %c0_i32, %c0_i32_0 : i32, i32
  }
  func.func @transform_7(%arg0: i32) -> (i32, i32) {
    %c0_i32 = arith.constant 0 : i32
    %c0_i32_0 = arith.constant 0 : i32
    %c0_i32_1 = arith.constant 0 : i32
    return %c0_i32, %c0_i32_0 : i32, i32
  }
  func.func @transform_8(%arg0: i32) -> (i32, i32) {
    %c0_i32 = arith.constant 0 : i32
    %c0_i32_0 = arith.constant 0 : i32
    %c0_i32_1 = arith.constant 0 : i32
    return %c0_i32, %c0_i32_0 : i32, i32
  }
  func.func @transform_9(%arg0: i32) -> (i32, i32) {
    %c0_i32 = arith.constant 0 : i32
    %c0_i32_0 = arith.constant 0 : i32
    %c0_i32_1 = arith.constant 0 : i32
    return %c0_i32, %c0_i32_0 : i32, i32
  }
  func.func @transform_10(%arg0: i32) -> (i32, i32) {
    %c0_i32 = arith.constant 0 : i32
    %c0_i32_0 = arith.constant 0 : i32
    %c0_i32_1 = arith.constant 0 : i32
    return %c0_i32, %c0_i32_0 : i32, i32
  }
  func.func @transform_11(%arg0: i32) -> (i32, i32) {
    %c0_i32 = arith.constant 0 : i32
    %c0_i32_0 = arith.constant 0 : i32
    return %arg0, %c0_i32 : i32, i32
  }
}

</mosaic_0001>

<bundles_post_ra>
// kernel: imitation_nn_forward.1
= control target key start
LH: loop header
LB: loop body
LE: loop exit
PB: predicated region body
PF: predicated region fallthrough
CT: control target
= control target key end

     0   :  { %16 = vsyncpa [#allocation3], 0  ;;  %s4610_s0 = inlined_call_operand.vmem [shape: f32[16,64], index: 0, kind: input, shape index: {}]   ;;  %s4611_s1 = inlined_call_operand.hbm [shape: bf16[64,1024], index: 1, kind: input, shape index: {}]   ;;  %s4612_s2 = inlined_call_operand.vmem [shape: f32[1,1024], index: 2, kind: input, shape index: {}]   ;;  %s4613_s3 = inlined_call_operand.hbm [shape: bf16[1024,512], index: 3, kind: input, shape index: {}]   ;;  %s4614_s4 = inlined_call_operand.vmem [shape: f32[1,512], index: 4, kind: input, shape index: {}]   ;;  %s4615_s5 = inlined_call_operand.hbm [shape: bf16[512,256], index: 5, kind: input, shape index: {}]   ;;  %s4616_s6 = inlined_call_operand.vmem [shape: f32[1,256], index: 6, kind: input, shape index: {}]   ;;  %s4617_s7 = inlined_call_operand.hbm [shape: bf16[256,128], index: 7, kind: input, shape index: {}]   ;;  %s4618_s8 = inlined_call_operand.vmem [shape: f32[1,128], index: 8, kind: input, shape index: {}]   ;;  %s4619_s9 = inlined_call_operand.vmem [shape: bf16[128,2], index: 9, kind: input, shape index: {}]   ;;  %s4620_s10 = inlined_call_operand.vmem [shape: f32[1,2], index: 10, kind: input, shape index: {}]   ;;  %s4621_s11 = inlined_call_operand.vmem [shape: f32[16,2], index: 11, kind: output, shape index: {}]  }
   0x1   :  { %17 = vsyncpa [#allocation5], 0 }
   0x2   :  { %18 = vsyncpa [#allocation8], 0  ;;  %s4315_s17 = smov [#allocation4]   ;;  %s4221_s21 = scalar_lea.hbm %s4613_s3, 32768 }
   0x3   :  { %s40_s18 = sshll.u32 %s4315_s17, 4  ;;  %p4222_p0 = scmp.ne.s32.totalorder %s4613_s3, %s4221_s21  ;;  %s41_s18 = int_to_ptr.vmem [resolvable:$true] %s40_s18 }
   0x4   :  { %p4225_p1 = scmp.lt.u32.totalorder %s4221_s21, %s4613_s3 }
   0x6   :  { %p4227_p2 = pnand %p4225_p1, %p4222_p0 }
   0x8   :  { %4230 = shalt.err (!%p4227_p2)
}
   0x9   :  { %s4231_s26 = scalar_lea.vmem %s41_s18, 32768  ;;  %p4236_p4 = scmp.lt.s32.totalorder %s41_s18, %s41_s18 }
   0xa   :  { %p4232_p3 = scmp.ne.s32.totalorder %s41_s18, %s4231_s26  ;;  %p4237_p5 = scmp.lt.s32.totalorder %s4231_s26, %s4231_s26 }
   0xc   :  { %p4238_p6 = por %p4237_p5, %p4236_p4 }
   0xe   :  { %p4239_p7 = pnand %p4238_p6, %p4232_p3 }
  0x10   :  { %4242 = shalt.err (!%p4239_p7)
}
  0x11   :  { %s4316_s27 = smov 256   ;;  %s4317_s28 = smov 16  }
  0x12   :  { %46 = dma.hbm_to_vmem [thread:$0]  %s4613_s3, 32768, %s41_s18, [#allocation5], %s4316_s27, %s4316_s27, %s4317_s28  }
  0x13   :  { %s4318_s12 = smov [#allocation2]   ;;  %s4243_s16 = scalar_lea.hbm %s4611_s1, 4096 }
  0x14   :  { %s26_s13 = sshll.u32 %s4318_s12, 4  ;;  %p4244_p8 = scmp.ne.s32.totalorder %s4611_s1, %s4243_s16  ;;  %s27_s13 = int_to_ptr.vmem [resolvable:$true] %s26_s13 }
  0x15   :  { %p4247_p9 = scmp.lt.u32.totalorder %s4243_s16, %s4611_s1 }
  0x17   :  { %p4249_p10 = pnand %p4247_p9, %p4244_p8 }
  0x19   :  { %4252 = shalt.err (!%p4249_p10)
}
  0x1a   :  { %s4253_s22 = scalar_lea.vmem %s27_s13, 4096  ;;  %p4258_p12 = scmp.lt.s32.totalorder %s27_s13, %s27_s13 }
  0x1b   :  { %p4254_p11 = scmp.ne.s32.totalorder %s27_s13, %s4253_s22  ;;  %p4259_p13 = scmp.lt.s32.totalorder %s4253_s22, %s4253_s22 }
  0x1d   :  { %p4260_p0 = por %p4259_p13, %p4258_p12 }
  0x1f   :  { %p4261_p1 = pnand %p4260_p0, %p4254_p11 }
  0x21   :  { %4264 = shalt.err (!%p4261_p1)
}
  0x22   :  { %s4319_s3 = smov 512   ;;  %s4320_s18 = smov 32  }
  0x23   :  { %32 = dma.hbm_to_vmem [thread:$0]  %s4611_s1, 4096, %s27_s13, [#allocation3], %s4319_s3, %s4319_s3, %s4320_s18  }
  0x24   :  { %s4321_s25 = smov [#allocation6]   ;;  %s4265_s29 = scalar_lea.hbm %s4615_s5, 8192 }
  0x25   :  { %s54_s26 = sshll.u32 %s4321_s25, 4  ;;  %p4266_p2 = scmp.ne.s32.totalorder %s4615_s5, %s4265_s29  ;;  %s55_s26 = int_to_ptr.vmem [resolvable:$true] %s54_s26 }
  0x26   :  { %p4269_p3 = scmp.lt.u32.totalorder %s4265_s29, %s4615_s5 }
  0x28   :  { %p4271_p4 = pnand %p4269_p3, %p4266_p2 }
  0x2a   :  { %4274 = shalt.err (!%p4271_p4)
}
  0x2b   :  { %s4275_s16 = scalar_lea.vmem %s55_s26, 8192  ;;  %p4280_p6 = scmp.lt.s32.totalorder %s55_s26, %s55_s26 }
  0x2c   :  { %p4276_p5 = scmp.ne.s32.totalorder %s55_s26, %s4275_s16  ;;  %p4281_p7 = scmp.lt.s32.totalorder %s4275_s16, %s4275_s16 }
  0x2e   :  { %p4282_p8 = por %p4281_p7, %p4280_p6 }
  0x30   :  { %p4283_p9 = pnand %p4282_p8, %p4276_p5 }
  0x32   :  { %4286 = shalt.err (!%p4283_p9)
}
  0x33   :  { %s4322_s1 = smov 128   ;;  %s4323_s13 = smov 8  }
  0x34   :  { %60 = dma.hbm_to_vmem [thread:$0]  %s4615_s5, 8192, %s55_s26, [#allocation5], %s4322_s1, %s4322_s1, %s4323_s13  }
  0x35   :  { %s4324_s20 = smov [#allocation7]   ;;  %s4287_s18 = scalar_lea.hbm %s4617_s7, 2048 }
  0x36   :  { %s68_s21 = sshll.u32 %s4324_s20, 4  ;;  %p4288_p10 = scmp.ne.s32.totalorder %s4617_s7, %s4287_s18  ;;  %s69_s21 = int_to_ptr.vmem [resolvable:$true] %s68_s21 }
  0x37   :  { %p4291_p11 = scmp.lt.u32.totalorder %s4287_s18, %s4617_s7 }
  0x39   :  { %p4293_p12 = pnand %p4291_p11, %p4288_p10 }
  0x3b   :  { %4296 = shalt.err (!%p4293_p12)
}
  0x3c   :  { %s4297_s28 = scalar_lea.vmem %s69_s21, 2048  ;;  %p4302_p0 = scmp.lt.s32.totalorder %s69_s21, %s69_s21 }
  0x3d   :  { %p4298_p13 = scmp.ne.s32.totalorder %s69_s21, %s4297_s28  ;;  %p4303_p1 = scmp.lt.s32.totalorder %s4297_s28, %s4297_s28 }
  0x3f   :  { %p4304_p2 = por %p4303_p1, %p4302_p0 }
  0x41   :  { %p4305_p3 = pnand %p4304_p2, %p4298_p13 }
  0x43   :  { %4308 = shalt.err (!%p4305_p3)
}
  0x44   :  { %s4325_s5 = smov 64   ;;  %s4326_s26 = smov 4  }
  0x45   :  { %74 = dma.hbm_to_vmem [thread:$0]  %s4617_s7, 2048, %s69_s21, [#allocation8], %s4325_s5, %s4325_s5, %s4326_s26  }
  0x46   :  { %4309 = dma.done.wait [#allocation3], 4096  }
  0x47   :  { %4310 = vsyncadd [#allocation3], 4294963200 }
  0x48   :  { %4311 = dma.done.wait [#allocation5], 40960  }
  0x49   :  { %4312 = vsyncadd [#allocation5], 4294926336 }
  0x4a   :  { %4313 = dma.done.wait [#allocation8], 2048  }
  0x4b   :  { %4314 = vsyncadd [#allocation8], 4294965248  ;;  %v4327_v0 = vmov 0   ;;  %v97_v1 = vld [vmem:[#allocation2] sm:$0xff]  ;;  %v98_v17 = vld [vmem:[#allocation2 + $0x8] sm:$0xff]  ;;  %vm331_vm0 = vcmask 523264  }
  0x4c   :  { %367 = vmatprep.mubr.bf16.mxu1 %v4327_v0  ;;  %v101_v2 = vld [vmem:[#allocation2 + $0x20] sm:$0xff]  ;;  %v102_v18 = vld [vmem:[#allocation2 + $0x28] sm:$0xff]  ;;  %v99_v44 = vld [vmem:[#allocation2 + $0x10] sm:$0xff]  ;;  %vm4329_vm1 = vmmov 0   ;;  %vm3215_vm2 = vcmask 15360  }
  0x4d   :  { %v105_v3 = vld [vmem:[#allocation2 + $0x40] sm:$0xff]  ;;  %v3226_v4 = vcombine.high %v97_v1, %v101_v2  ;;  %v3225_v5 = vcombine.low %v97_v1, %v101_v2  ;;  %v95_v19 = vld [vmem:[%s4610_s0 + $0x8] sm:$0xff]  ;;  %v3228_v22 = vcombine.high %v98_v17, %v102_v18  ;;  %v3227_v28 = vcombine.low %v98_v17, %v102_v18  ;;  %v103_v45 = vld [vmem:[#allocation2 + $0x30] sm:$0xff] }
  0x4e   :  { %v109_v6 = vld [vmem:[#allocation2 + $0x60] sm:$0xff]  ;;  %v106_v23 = vld [vmem:[#allocation2 + $0x48] sm:$0xff]  ;;  %v3230_v49 = vcombine.high %v99_v44, %v103_v45  ;;  %v107_v50 = vld [vmem:[#allocation2 + $0x50] sm:$0xff]  ;;  %v3229_v53 = vcombine.low %v99_v44, %v103_v45 }
  0x4f   :  { %v3234_v7 = vcombine.high %v105_v3, %v109_v6  ;;  %v113_v8 = vld [vmem:[#allocation2 + $0x80] sm:$0xff]  ;;  %335 = vmatprep.subr.bf16.mxu1 %v3226_v4  ;;  %v3233_v10 = vcombine.low %v105_v3, %v109_v6  ;;  %v110_v24 = vld [vmem:[#allocation2 + $0x68] sm:$0xff]  ;;  %v111_v51 = vld [vmem:[#allocation2 + $0x70] sm:$0xff] }
  0x50   :  { %v117_v9 = vld [vmem:[#allocation2 + $0xa0] sm:$0xff]  ;;  %336 = vmatpush1.bf16.msra.mxu1 %v3225_v5  ;;  %v3236_v30 = vcombine.high %v106_v23, %v110_v24  ;;  %v114_v32 = vld [vmem:[#allocation2 + $0x88] sm:$0xff]  ;;  %v3235_v35 = vcombine.low %v106_v23, %v110_v24  ;;  %v3238_v54 = vcombine.high %v107_v50, %v111_v51  ;;  %v115_v56 = vld [vmem:[#allocation2 + $0x90] sm:$0xff]  ;;  %v3237_v59 = vcombine.low %v107_v50, %v111_v51 }
  0x51   :  { %337 = vmatprep.subr.bf16.mxu1 %v3234_v7  ;;  %v3242_v11 = vcombine.high %v113_v8, %v117_v9  ;;  %v121_v12 = vld [vmem:[#allocation2 + $0xc0] sm:$0xff]  ;;  %v3241_v14 = vcombine.low %v113_v8, %v117_v9  ;;  %v118_v33 = vld [vmem:[#allocation2 + $0xa8] sm:$0xff]  ;;  %v119_v57 = vld [vmem:[#allocation2 + $0xb0] sm:$0xff] }
  0x52   :  { %v125_v13 = vld [vmem:[#allocation2 + $0xe0] sm:$0xff]  ;;  %v3244_v37 = vcombine.high %v114_v32, %v118_v33  ;;  %v122_v38 = vld [vmem:[#allocation2 + $0xc8] sm:$0xff]  ;;  %v3243_v41 = vcombine.low %v114_v32, %v118_v33  ;;  %v3246_v61 = vcombine.high %v115_v56, %v119_v57  ;;  %v123_v62 = vld [vmem:[#allocation2 + $0xd0] sm:$0xff]  ;;  %v3245_v2 = vcombine.low %v115_v56, %v119_v57 }
  0x53   :  { %v3250_v15 = vcombine.high %v121_v12, %v125_v13  ;;  %v94_v16 = vld [vmem:[%s4610_s0] sm:$0xff]  ;;  %v3249_v20 = vcombine.low %v121_v12, %v125_v13  ;;  %v126_v39 = vld [vmem:[#allocation2 + $0xe8] sm:$0xff]  ;;  %v127_v63 = vld [vmem:[#allocation2 + $0xf0] sm:$0xff] }
  0x54   :  { %338 = vmatpush1.bf16.msra.mxu1 %v3233_v10  ;;  %v3713_v21 = vld [vmem:[#allocation4 + $0x4] ss:$16 sps:$4 sm:$0xff]   ;;  %v3718_v25 = vld [vmem:[#allocation4] ss:$16 sps:$4 sm:$0xff]   ;;  %v4445_v27 = vpack.c.bf16 %v95_v19, %v94_v16  ;;  %v3252_v43 = vcombine.high %v122_v38, %v126_v39  ;;  %v3251_v47 = vcombine.low %v122_v38, %v126_v39  ;;  %v3254_v4 = vcombine.high %v123_v62, %v127_v63  ;;  %v100_v5 = vld [vmem:[#allocation2 + $0x18] sm:$0xff] }
  0x55   :  { %339 = vmatprep.subr.bf16.mxu1 %v3242_v11  ;;  %2081 = vmatprep.subr.bf16.mxu0 %v3713_v21  ;;  %v3719_v26 = vld [vmem:[#allocation4 + $0x24] ss:$16 sps:$4 sm:$0xff]   ;;  %v3724_v29 = vld [vmem:[#allocation4 + $0x20] ss:$16 sps:$4 sm:$0xff]   ;;  %v104_v6 = vld [vmem:[#allocation2 + $0x38] sm:$0xff]  ;;  %v3253_v8 = vcombine.low %v123_v62, %v127_v63 }
  0x56   :  { %2082 = vmatpush1.bf16.msra.mxu0 %v3718_v25  ;;  %v3725_v31 = vld [vmem:[#allocation4 + $0x44] ss:$16 sps:$4 sm:$0xff]   ;;  %v3730_v34 = vld [vmem:[#allocation4 + $0x40] ss:$16 sps:$4 sm:$0xff]   ;;  %v3232_v10 = vcombine.high %v100_v5, %v104_v6  ;;  %v108_v11 = vld [vmem:[#allocation2 + $0x58] sm:$0xff] }
  0x57   :  { %2083 = vmatprep.subr.bf16.mxu0 %v3719_v26  ;;  %v3731_v36 = vld [vmem:[#allocation4 + $0x64] ss:$16 sps:$4 sm:$0xff]   ;;  %v3736_v40 = vld [vmem:[#allocation4 + $0x60] ss:$16 sps:$4 sm:$0xff]   ;;  %v112_v12 = vld [vmem:[#allocation2 + $0x78] sm:$0xff] }
  0x58   :  { %340 = vmatpush1.bf16.msra.mxu1 %v3241_v14  ;;  %v3737_v42 = vld [vmem:[#allocation4 + $0x84] ss:$16 sps:$4 sm:$0xff]   ;;  %v3742_v46 = vld [vmem:[#allocation4 + $0x80] ss:$16 sps:$4 sm:$0xff]   ;;  %v3231_v14 = vcombine.low %v100_v5, %v104_v6  ;;  %v120_v16 = vld [vmem:[#allocation2 + $0xb8] sm:$0xff]  ;;  %v3240_v18 = vcombine.high %v108_v11, %v112_v12  ;;  %v3239_v21 = vcombine.low %v108_v11, %v112_v12 }
  0x59   :  { %341 = vmatprep.subr.bf16.mxu1 %v3250_v15  ;;  %v3743_v48 = vld [vmem:[#allocation4 + $0xa4] ss:$16 sps:$4 sm:$0xff]   ;;  %v3748_v52 = vld [vmem:[#allocation4 + $0xa0] ss:$16 sps:$4 sm:$0xff]   ;;  %v116_v15 = vld [vmem:[#allocation2 + $0x98] sm:$0xff] }
  0x5a   :  { %2084 = vmatpush1.bf16.msra.mxu0 %v3724_v29  ;;  %v3749_v55 = vld [vmem:[#allocation4 + $0xc4] ss:$16 sps:$4 sm:$0xff]   ;;  %v3754_v58 = vld [vmem:[#allocation4 + $0xc0] ss:$16 sps:$4 sm:$0xff]   ;;  %v128_v23 = vld [vmem:[#allocation2 + $0xf8] sm:$0xff]  ;;  %v3248_v24 = vcombine.high %v116_v15, %v120_v16 }
  0x5b   :  { %2085 = vmatprep.subr.bf16.mxu0 %v3725_v31  ;;  %v3755_v60 = vld [vmem:[#allocation4 + $0xe4] ss:$16 sps:$4 sm:$0xff]   ;;  %v3760_v1 = vld [vmem:[#allocation4 + $0xe0] ss:$16 sps:$4 sm:$0xff]   ;;  %v3717_v32 = vld [vmem:[#allocation4 + $0xc] ss:$16 sps:$4 sm:$0xff]  }
  0x5c   :  { %342 = vmatpush1.bf16.msra.mxu1 %v3249_v20  ;;  %v3761_v3 = vld [vmem:[#allocation4 + $0x104] ss:$16 sps:$4 sm:$0xff]   ;;  %v3766_v7 = vld [vmem:[#allocation4 + $0x100] ss:$16 sps:$4 sm:$0xff]   ;;  %v3729_v38 = vld [vmem:[#allocation4 + $0x4c] ss:$16 sps:$4 sm:$0xff]  }
  0x5d   :  { %378 = vmatprep.subr.bf16.mxu1 %v3228_v22  ;;  %v3767_v9 = vld [vmem:[#allocation4 + $0x124] ss:$16 sps:$4 sm:$0xff]   ;;  %v3772_v13 = vld [vmem:[#allocation4 + $0x120] ss:$16 sps:$4 sm:$0xff]   ;;  %v124_v22 = vld [vmem:[#allocation2 + $0xd8] sm:$0xff] }
  0x5e   :  { %2086 = vmatpush1.bf16.msra.mxu0 %v3730_v34  ;;  %v3773_v17 = vld [vmem:[#allocation4 + $0x144] ss:$16 sps:$4 sm:$0xff]   ;;  %v3778_v19 = vld [vmem:[#allocation4 + $0x140] ss:$16 sps:$4 sm:$0xff]   ;;  %v3256_v29 = vcombine.high %v124_v22, %v128_v23  ;;  %v3255_v33 = vcombine.low %v124_v22, %v128_v23  ;;  %v3727_v39 = vld [vmem:[#allocation4 + $0x48] ss:$16 sps:$4 sm:$0xff]  }
  0x5f   :  { %3257 = vmatmul.mubr.msk.bf16.vlgmr.msra.gmra.mrb[0].mxu1 %vm331_vm0, %v4445_v27  ;;  %2087 = vmatprep.subr.bf16.mxu0 %v3731_v36  ;;  %v3779_v20 = vld [vmem:[#allocation4 + $0x164] ss:$16 sps:$4 sm:$0xff]   ;;  %v3784_v25 = vld [vmem:[#allocation4 + $0x160] ss:$16 sps:$4 sm:$0xff]   ;;  %v3723_v36 = vld [vmem:[#allocation4 + $0x2c] ss:$16 sps:$4 sm:$0xff]  }
  0x60   :  { %379 = vmatpush1.bf16.msra.mxu1 %v3227_v28  ;;  %410 = vmatprep.mubr.bf16.mxu1 %v4327_v0  ;;  %v3785_v26 = vld [vmem:[#allocation4 + $0x184] ss:$16 sps:$4 sm:$0xff]   ;;  %v3247_v28 = vcombine.low %v116_v15, %v120_v16  ;;  %v3796_v34 = vld [vmem:[#allocation4 + $0x1a0] ss:$16 sps:$4 sm:$0xff]   ;;  %v3747_v44 = vld [vmem:[#allocation4 + $0xac] ss:$16 sps:$4 sm:$0xff]  }
  0x61   :  { %380 = vmatprep.subr.bf16.mxu1 %v3236_v30  ;;  %v3790_v30 = vld [vmem:[#allocation4 + $0x180] ss:$16 sps:$4 sm:$0xff]   ;;  %v3791_v31 = vld [vmem:[#allocation4 + $0x1a4] ss:$16 sps:$4 sm:$0xff]   ;;  %v3745_v45 = vld [vmem:[#allocation4 + $0xa8] ss:$16 sps:$4 sm:$0xff]  }
  0x62   :  { %2088 = vmatpush1.bf16.msra.mxu0 %v3736_v40  ;;  %v3735_v40 = vld [vmem:[#allocation4 + $0x6c] ss:$16 sps:$4 sm:$0xff]   ;;  %v3763_v50 = vld [vmem:[#allocation4 + $0x108] ss:$16 sps:$4 sm:$0xff]   ;;  %v3802_v57 = vld [vmem:[#allocation4 + $0x1c0] ss:$16 sps:$4 sm:$0xff]  }
  0x63   :  { %2089 = vmatprep.subr.bf16.mxu0 %v3737_v42  ;;  %v3741_v42 = vld [vmem:[#allocation4 + $0x8c] ss:$16 sps:$4 sm:$0xff]   ;;  %v3811_v62 = vld [vmem:[#allocation4 + $0x204] ss:$16 sps:$4 sm:$0xff]   ;;  %v3787_v63 = vld [vmem:[#allocation4 + $0x188] ss:$16 sps:$4 sm:$0xff]  }
  0x64   :  { %381 = vmatpush1.bf16.msra.mxu1 %v3235_v35  ;;  %v3715_v35 = vld [vmem:[#allocation4 + $0x8] ss:$16 sps:$4 sm:$0xff]   ;;  %v3771_v51 = vld [vmem:[#allocation4 + $0x12c] ss:$16 sps:$4 sm:$0xff]   ;;  %v4466_v11 = vld [vmem:[%s4612_s2] sm:$0xff] }
  0x65   :  { %382 = vmatprep.subr.bf16.mxu1 %v3244_v37  ;;  %v3721_v37 = vld [vmem:[#allocation4 + $0x28] ss:$16 sps:$4 sm:$0xff]   ;;  %v3783_v56 = vld [vmem:[#allocation4 + $0x16c] ss:$16 sps:$4 sm:$0xff]  }
  0x66   :  { %2090 = vmatpush1.bf16.msra.mxu0 %v3742_v46  ;;  %v3753_v46 = vld [vmem:[#allocation4 + $0xcc] ss:$16 sps:$4 sm:$0xff]   ;;  %v3805_v6 = vld [vmem:[#allocation4 + $0x1e8] ss:$16 sps:$4 sm:$0xff]  }
  0x67   :  { %2091 = vmatprep.subr.bf16.mxu0 %v3743_v48  ;;  %v3757_v48 = vld [vmem:[#allocation4 + $0xe8] ss:$16 sps:$4 sm:$0xff]   ;;  %v3807_v5 = vld [vmem:[#allocation4 + $0x1ec] ss:$16 sps:$4 sm:$0xff]  }
  0x68   :  { %383 = vmatpush1.bf16.msra.mxu1 %v3243_v41  ;;  %v3733_v41 = vld [vmem:[#allocation4 + $0x68] ss:$16 sps:$4 sm:$0xff]  }
  0x69   :  { %384 = vmatprep.subr.bf16.mxu1 %v3252_v43  ;;  %v3739_v43 = vld [vmem:[#allocation4 + $0x88] ss:$16 sps:$4 sm:$0xff]  }
  0x6a   :  { %2092 = vmatpush1.bf16.msra.mxu0 %v3748_v52  ;;  %v3769_v52 = vld [vmem:[#allocation4 + $0x128] ss:$16 sps:$4 sm:$0xff]  }
  0x6b   :  { %2093 = vmatprep.subr.bf16.mxu0 %v3749_v55  ;;  %v3797_v55 = vld [vmem:[#allocation4 + $0x1c4] ss:$16 sps:$4 sm:$0xff]  }
  0x6c   :  { %385 = vmatpush1.bf16.msra.mxu1 %v3251_v47  ;;  %v3759_v47 = vld [vmem:[#allocation4 + $0xec] ss:$16 sps:$4 sm:$0xff]  }
  0x6d   :  { %421 = vmatprep.subr.bf16.mxu1 %v3230_v49  ;;  %v3765_v49 = vld [vmem:[#allocation4 + $0x10c] ss:$16 sps:$4 sm:$0xff]  }
  0x6e   :  { %2094 = vmatpush1.bf16.msra.mxu0 %v3754_v58  ;;  %v3781_v58 = vld [vmem:[#allocation4 + $0x168] ss:$16 sps:$4 sm:$0xff]  }
  0x6f   :  { %3258 = vmatmul.mubr.msk.bf16.vlgmr.msra.gmra.mrb[4].mxu1 %vm331_vm0, %v4445_v27  ;;  %2095 = vmatprep.subr.bf16.mxu0 %v3755_v60  ;;  %v3789_v60 = vld [vmem:[#allocation4 + $0x18c] ss:$16 sps:$4 sm:$0xff]  }
  0x70   :  { %422 = vmatpush1.bf16.msra.mxu1 %v3229_v53  ;;  %453 = vmatprep.mubr.bf16.mxu1 %v4327_v0  ;;  %v3777_v53 = vld [vmem:[#allocation4 + $0x14c] ss:$16 sps:$4 sm:$0xff]  }
  0x71   :  { %423 = vmatprep.subr.bf16.mxu1 %v3238_v54  ;;  %v3775_v54 = vld [vmem:[#allocation4 + $0x148] ss:$16 sps:$4 sm:$0xff]  }
  0x72   :  { %2096 = vmatpush1.bf16.msra.mxu0 %v3760_v1  ;;  %v3795_v1 = vld [vmem:[#allocation4 + $0x1ac] ss:$16 sps:$4 sm:$0xff]  }
  0x73   :  { %2097 = vmatprep.subr.bf16.mxu0 %v3761_v3  ;;  %v3801_v3 = vld [vmem:[#allocation4 + $0x1cc] ss:$16 sps:$4 sm:$0xff]  }
  0x74   :  { %424 = vmatpush1.bf16.msra.mxu1 %v3237_v59  ;;  %v3803_v59 = vld [vmem:[#allocation4 + $0x1e4] ss:$16 sps:$4 sm:$0xff]  }
  0x75   :  { %425 = vmatprep.subr.bf16.mxu1 %v3246_v61  ;;  %v3808_v61 = vld [vmem:[#allocation4 + $0x1e0] ss:$16 sps:$4 sm:$0xff]  }
  0x76   :  { %2098 = vmatpush1.bf16.msra.mxu0 %v3766_v7  ;;  %v3814_v7 = vld [vmem:[#allocation4 + $0x20c] ss:$16 sps:$4 sm:$0xff]  }
  0x77   :  { %2099 = vmatprep.subr.bf16.mxu0 %v3767_v9 }
  0x78   :  { %426 = vmatpush1.bf16.msra.mxu1 %v3245_v2  ;;  %v3793_v2 = vld [vmem:[#allocation4 + $0x1a8] ss:$16 sps:$4 sm:$0xff]  }
  0x79   :  { %427 = vmatprep.subr.bf16.mxu1 %v3254_v4  ;;  %v3799_v4 = vld [vmem:[#allocation4 + $0x1c8] ss:$16 sps:$4 sm:$0xff]  }
  0x7a   :  { %2100 = vmatpush1.bf16.msra.mxu0 %v3772_v13 }
  0x7b   :  { %2101 = vmatprep.subr.bf16.mxu0 %v3773_v17 }
  0x7c   :  { %428 = vmatpush1.bf16.msra.mxu1 %v3253_v8  ;;  %v131_v8 = vlaneseq }
  0x7d   :  { %464 = vmatprep.subr.bf16.mxu1 %v3232_v10 }
  0x7e   :  { %2102 = vmatpush1.bf16.msra.mxu0 %v3778_v19  ;;  %v4458_v9 = vshrl.u32 %v131_v8, 7  ;;  %v3848_v8 = vld [vmem:[#allocation4 + $0x2c8] ss:$16 sps:$4 sm:$0xff]  }
  0x7f   :  { %3259 = vmatmul.mubr.msk.bf16.vlgmr.msra.gmra.mrb[8].mxu1 %vm331_vm0, %v4445_v27  ;;  %2103 = vmatprep.subr.bf16.mxu0 %v3779_v20 }
  0x80   :  { %465 = vmatpush1.bf16.msra.mxu1 %v3231_v14  ;;  %496 = vmatprep.mubr.bf16.mxu1 %v4327_v0  ;;  %v4461_v10 = vsub.s32 0, %v4458_v9  ;;  %v4469_v12 = vsub.s32 1, %v4458_v9 }
  0x81   :  { %466 = vmatprep.subr.bf16.mxu1 %v3240_v18 }
  0x82   :  { %2104 = vmatpush1.bf16.msra.mxu0 %v3784_v25  ;;  %v134_v13 = vrot.slane %v4466_v11, %v4461_v10  ;;  %v138_v15 = vrot.slane %v4466_v11, %v4469_v12 }
  0x83   :  { %2105 = vmatprep.subr.bf16.mxu0 %v3785_v26  ;;  %v3809_v26 = vld [vmem:[#allocation4 + $0x200] ss:$16 sps:$4 sm:$0xff]  }
  0x84   :  { %467 = vmatpush1.bf16.msra.mxu1 %v3239_v21 }
  0x85   :  { %468 = vmatprep.subr.bf16.mxu1 %v3248_v24 }
  0x86   :  { %2106 = vmatpush1.bf16.msra.mxu0 %v3790_v30  ;;  %v3817_v30 = vld [vmem:[#allocation4 + $0x224] ss:$16 sps:$4 sm:$0xff]  }
  0x87   :  { %2107 = vmatprep.subr.bf16.mxu0 %v3791_v31  ;;  %v3820_v31 = vld [vmem:[#allocation4 + $0x22c] ss:$16 sps:$4 sm:$0xff]  }
  0x88   :  { %469 = vmatpush1.bf16.msra.mxu1 %v3247_v28  ;;  %v3812_v28 = vld [vmem:[#allocation4 + $0x208] ss:$16 sps:$4 sm:$0xff]  }
  0x89   :  { %470 = vmatprep.subr.bf16.mxu1 %v3256_v29 }
  0x8a   :  { %2108 = vmatpush1.bf16.msra.mxu0 %v3796_v34  ;;  %v3815_v34 = vld [vmem:[#allocation4 + $0x220] ss:$16 sps:$4 sm:$0xff]  }
  0x8b   :  { %2109 = vmatprep.subr.bf16.mxu0 %v3797_v55 }
  0x8c   :  { %471 = vmatpush1.bf16.msra.mxu1 %v3255_v33  ;;  %v145_v33 = vsub.s32 3, %v4458_v9 }
  0x8d   :  { %2253 = vmatprep.subr.bf16.mxu1 %v3717_v32  ;;  %v141_v32 = vsub.s32 2, %v4458_v9 }
  0x8e   :  { %2110 = vmatpush1.bf16.msra.mxu0 %v3802_v57  ;;  %v3833_v57 = vld [vmem:[#allocation4 + $0x280] ss:$16 sps:$4 sm:$0xff]  }
  0x8f   :  { %3260 = vmatmul.mubr.msk.bf16.vlgmr.msra.gmra.mrb[12].mxu1 %vm331_vm0, %v4445_v27  ;;  %v3751_v27 = vld [vmem:[#allocation4 + $0xc8] ss:$16 sps:$4 sm:$0xff]   ;;  %2111 = vmatprep.subr.bf16.mxu0 %v3803_v59 }
  0x90   :  { %2254 = vmatpush1.bf16.msra.mxu1 %v3715_v35  ;;  %v3818_v35 = vld [vmem:[#allocation4 + $0x228] ss:$16 sps:$4 sm:$0xff]  }
  0x91   :  { %2255 = vmatprep.subr.bf16.mxu1 %v3723_v36  ;;  %v3823_v36 = vld [vmem:[#allocation4 + $0x244] ss:$16 sps:$4 sm:$0xff]  }
  0x92   :  { %2112 = vmatpush1.bf16.msra.mxu0 %v3808_v61  ;;  %v3844_v61 = vld [vmem:[#allocation4 + $0x2ac] ss:$16 sps:$4 sm:$0xff]  }
  0x93   :  { %2124 = vmatprep.subr.bf16.mxu0 %v3811_v62  ;;  %v149_v62 = vsub.s32 4, %v4458_v9 }
  0x94   :  { %2256 = vmatpush1.bf16.msra.mxu1 %v3721_v37  ;;  %v3826_v37 = vld [vmem:[#allocation4 + $0x24c] ss:$16 sps:$4 sm:$0xff]  }
  0x95   :  { %2257 = vmatprep.subr.bf16.mxu1 %v3729_v38  ;;  %v142_v38 = vrot.slane %v4466_v11, %v141_v32 }
  0x98   :  { %2258 = vmatpush1.bf16.msra.mxu1 %v3727_v39  ;;  %v146_v39 = vrot.slane %v4466_v11, %v145_v33 }
  0x99   :  { %2259 = vmatprep.subr.bf16.mxu1 %v3735_v40  ;;  %v3821_v40 = vld [vmem:[#allocation4 + $0x240] ss:$16 sps:$4 sm:$0xff]  }
  0x9c   :  { %2260 = vmatpush1.bf16.msra.mxu1 %v3733_v41  ;;  %v3824_v41 = vld [vmem:[#allocation4 + $0x248] ss:$16 sps:$4 sm:$0xff]  }
  0x9d   :  { %2261 = vmatprep.subr.bf16.mxu1 %v3741_v42 }
  0xa0   :  { %2262 = vmatpush1.bf16.msra.mxu1 %v3739_v43  ;;  %v3829_v43 = vld [vmem:[#allocation4 + $0x264] ss:$16 sps:$4 sm:$0xff]  }
  0xa1   :  { %2263 = vmatprep.subr.bf16.mxu1 %v3747_v44  ;;  %v3832_v44 = vld [vmem:[#allocation4 + $0x26c] ss:$16 sps:$4 sm:$0xff]  }
  0xa4   :  { %2264 = vmatpush1.bf16.msra.mxu1 %v3745_v45 }
  0xa5   :  { %2265 = vmatprep.subr.bf16.mxu1 %v3753_v46 }
  0xa8   :  { %2266 = vmatpush1.bf16.msra.mxu1 %v3751_v27 }
  0xa9   :  { %2267 = vmatprep.subr.bf16.mxu1 %v3759_v47 }
  0xac   :  { %2268 = vmatpush1.bf16.msra.mxu1 %v3757_v48 }
  0xad   :  { %2269 = vmatprep.subr.bf16.mxu1 %v3765_v49 }
  0xb0   :  { %2270 = vmatpush1.bf16.msra.mxu1 %v3763_v50  ;;  %v3827_v50 = vld [vmem:[#allocation4 + $0x260] ss:$16 sps:$4 sm:$0xff]  }
  0xb1   :  { %2271 = vmatprep.subr.bf16.mxu1 %v3771_v51  ;;  %v3830_v51 = vld [vmem:[#allocation4 + $0x268] ss:$16 sps:$4 sm:$0xff]  }
  0xb4   :  { %2272 = vmatpush1.bf16.msra.mxu1 %v3769_v52 }
  0xb5   :  { %2273 = vmatprep.subr.bf16.mxu1 %v3777_v53  ;;  %v3835_v53 = vld [vmem:[#allocation4 + $0x284] ss:$16 sps:$4 sm:$0xff]  }
  0xb8   :  { %2274 = vmatpush1.bf16.msra.mxu1 %v3775_v54  ;;  %v3838_v54 = vld [vmem:[#allocation4 + $0x28c] ss:$16 sps:$4 sm:$0xff]  }
  0xb9   :  { %2275 = vmatprep.subr.bf16.mxu1 %v3783_v56 }
  0xbc   :  { %2276 = vmatpush1.bf16.msra.mxu1 %v3781_v58  ;;  %v3836_v58 = vld [vmem:[#allocation4 + $0x288] ss:$16 sps:$4 sm:$0xff]  }
  0xbd   :  { %2277 = vmatprep.subr.bf16.mxu1 %v3789_v60  ;;  %v3841_v60 = vld [vmem:[#allocation4 + $0x2a4] ss:$16 sps:$4 sm:$0xff]  }
  0xc0   :  { %2278 = vmatpush1.bf16.msra.mxu1 %v3787_v63  ;;  %v153_v63 = vsub.s32 5, %v4458_v9 }
  0xc1   :  { %2279 = vmatprep.subr.bf16.mxu1 %v3795_v1  ;;  %v3839_v1 = vld [vmem:[#allocation4 + $0x2a0] ss:$16 sps:$4 sm:$0xff]  }
  0xc4   :  { %2280 = vmatpush1.bf16.msra.mxu1 %v3793_v2  ;;  %v3842_v2 = vld [vmem:[#allocation4 + $0x2a8] ss:$16 sps:$4 sm:$0xff]  }
  0xc5   :  { %2281 = vmatprep.subr.bf16.mxu1 %v3801_v3  ;;  %v3847_v3 = vld [vmem:[#allocation4 + $0x2c4] ss:$16 sps:$4 sm:$0xff]  }
  0xc8   :  { %2282 = vmatpush1.bf16.msra.mxu1 %v3799_v4  ;;  %v3850_v4 = vld [vmem:[#allocation4 + $0x2cc] ss:$16 sps:$4 sm:$0xff]  }
  0xc9   :  { %2283 = vmatprep.subr.bf16.mxu1 %v3807_v5  ;;  %v150_v5 = vrot.slane %v4466_v11, %v149_v62 }
  0xcc   :  { %2284 = vmatpush1.bf16.msra.mxu1 %v3805_v6  ;;  %v154_v6 = vrot.slane %v4466_v11, %v153_v63 }
  0xcd   :  { %2296 = vmatprep.subr.bf16.mxu1 %v3814_v7  ;;  %v3845_v7 = vld [vmem:[#allocation4 + $0x2c0] ss:$16 sps:$4 sm:$0xff]  }
 0x132   :  { %v369_v14 = vpop.f32.mrb[0].mxu1 }
 0x133   :  { %v371_v16 = vpop.f32.mrb[1].mxu1  ;;  %v370_v18 = vadd.f32 %v369_v14, %v134_v13  ;;  %v3853_v14 = vld [vmem:[#allocation4 + $0x2e4] ss:$16 sps:$4 sm:$0xff]  }
 0x134   :  { %v373_v17 = vpop.f32.mrb[2].mxu1  ;;  %v372_v21 = vadd.f32 %v371_v16, %v138_v15 }
 0x135   :  { %v374_v19 = vadd.f32 %v373_v17, %v134_v13  ;;  %v375_v20 = vpop.f32.mrb[3].mxu1 }
 0x136   :  { %v376_v22 = vadd.f32 %v375_v20, %v138_v15  ;;  %v3856_v15 = vld [vmem:[#allocation4 + $0x2ec] ss:$16 sps:$4 sm:$0xff]  }
 0x137   :  { %v507_v23 = vpack.c.bf16 %v374_v19, %v370_v18 }
 0x138   :  { %v508_v24 = vpack.c.bf16 %v376_v22, %v372_v21  ;;  %v3851_v22 = vld [vmem:[#allocation4 + $0x2e0] ss:$16 sps:$4 sm:$0xff]  }
 0x139   :  { %v515_v29 = vmax.bf16 %v4327_v0, %v507_v23  ;;  %v3854_v23 = vld [vmem:[#allocation4 + $0x2e8] ss:$16 sps:$4 sm:$0xff]  }
 0x13a   :  { %v516_v25 = vmax.bf16 %v4327_v0, %v508_v24 }
 0x13c   :  { %2113 = vmatprep.mubr.bf16.mxu0 %v516_v25  ;;  %2285 = vmatprep.mubr.bf16.mxu1 %v516_v25  ;;  %v3859_v25 = vld [vmem:[#allocation4 + $0x304] ss:$16 sps:$4 sm:$0xff]  }
 0x13d   :  { %2114 = vmatmul.mubr.bf16.vlgmr.msra.gmra.mrb[0].mxu0 %v515_v29  ;;  %2286 = vmatmul.mubr.bf16.vlgmr.msra.gmra.mrb[16].mxu1 %v515_v29 }
 0x13e   :  { %2125 = vmatpush1.bf16.msra.mxu0 %v3809_v26  ;;  %2297 = vmatpush1.bf16.msra.mxu1 %v3812_v28  ;;  %v3862_v26 = vld [vmem:[#allocation4 + $0x30c] ss:$16 sps:$4 sm:$0xff]  }
 0x13f   :  { %2126 = vmatprep.subr.bf16.mxu0 %v3817_v30  ;;  %2298 = vmatprep.subr.bf16.mxu1 %v3820_v31  ;;  %v3857_v30 = vld [vmem:[#allocation4 + $0x300] ss:$16 sps:$4 sm:$0xff]   ;;  %v3860_v31 = vld [vmem:[#allocation4 + $0x308] ss:$16 sps:$4 sm:$0xff]  }
 0x142   :  { %2127 = vmatpush1.bf16.msra.mxu0 %v3815_v34  ;;  %2299 = vmatpush1.bf16.msra.mxu1 %v3818_v35  ;;  %v412_v42 = vpop.f32.mrb[4].mxu1  ;;  %v3865_v34 = vld [vmem:[#allocation4 + $0x324] ss:$16 sps:$4 sm:$0xff]   ;;  %v3868_v35 = vld [vmem:[#allocation4 + $0x32c] ss:$16 sps:$4 sm:$0xff]  }
 0x143   :  { %2128 = vmatprep.subr.bf16.mxu0 %v3823_v36  ;;  %2300 = vmatprep.subr.bf16.mxu1 %v3826_v37  ;;  %v4485_v45 = vadd.f32 %v412_v42, %v142_v38  ;;  %v414_v46 = vpop.f32.mrb[5].mxu1  ;;  %v3863_v36 = vld [vmem:[#allocation4 + $0x320] ss:$16 sps:$4 sm:$0xff]   ;;  %v3866_v37 = vld [vmem:[#allocation4 + $0x328] ss:$16 sps:$4 sm:$0xff]  }
 0x144   :  { %v415_v27 = vadd.f32 %v414_v46, %v146_v39  ;;  %v416_v47 = vpop.f32.mrb[6].mxu1  ;;  %v3877_v42 = vld [vmem:[#allocation4 + $0x364] ss:$16 sps:$4 sm:$0xff]   ;;  %v3878_v46 = vld [vmem:[#allocation4 + $0x368] ss:$16 sps:$4 sm:$0xff]  }
 0x145   :  { %v4487_v48 = vadd.f32 %v416_v47, %v142_v38  ;;  %v418_v49 = vpop.f32.mrb[7].mxu1  ;;  %v3871_v38 = vld [vmem:[#allocation4 + $0x344] ss:$16 sps:$4 sm:$0xff]   ;;  %v3886_v47 = vld [vmem:[#allocation4 + $0x38c] ss:$16 sps:$4 sm:$0xff]  }
 0x146   :  { %2129 = vmatpush1.bf16.msra.mxu0 %v3821_v40  ;;  %2301 = vmatpush1.bf16.msra.mxu1 %v3824_v41  ;;  %v419_v52 = vadd.f32 %v418_v49, %v146_v39  ;;  %v3874_v39 = vld [vmem:[#allocation4 + $0x34c] ss:$16 sps:$4 sm:$0xff]   ;;  %v3869_v40 = vld [vmem:[#allocation4 + $0x340] ss:$16 sps:$4 sm:$0xff]   ;;  %v3872_v41 = vld [vmem:[#allocation4 + $0x348] ss:$16 sps:$4 sm:$0xff]  }
 0x147   :  { %2130 = vmatprep.subr.bf16.mxu0 %v3829_v43  ;;  %2302 = vmatprep.subr.bf16.mxu1 %v3832_v44  ;;  %v509_v55 = vpack.c.bf16 %v4487_v48, %v4485_v45  ;;  %v3880_v43 = vld [vmem:[#allocation4 + $0x36c] ss:$16 sps:$4 sm:$0xff]   ;;  %v3875_v44 = vld [vmem:[#allocation4 + $0x360] ss:$16 sps:$4 sm:$0xff]   ;;  %v3919_v45 = vld [vmem:[#allocation4 + $0x444] ss:$16 sps:$4 sm:$0xff]  }
 0x148   :  { %v510_v56 = vpack.c.bf16 %v419_v52, %v415_v27  ;;  %v3883_v27 = vld [vmem:[#allocation4 + $0x384] ss:$16 sps:$4 sm:$0xff]   ;;  %v3881_v49 = vld [vmem:[#allocation4 + $0x380] ss:$16 sps:$4 sm:$0xff]   ;;  %v3892_v52 = vld [vmem:[#allocation4 + $0x3ac] ss:$16 sps:$4 sm:$0xff]  }
 0x149   :  { %v3922_v48 = vld [vmem:[#allocation4 + $0x44c] ss:$16 sps:$4 sm:$0xff]  }
 0x14a   :  { %2131 = vmatpush1.bf16.msra.mxu0 %v3827_v50  ;;  %2303 = vmatpush1.bf16.msra.mxu1 %v3830_v51  ;;  %v518_v59 = vmax.bf16 %v4327_v0, %v510_v56  ;;  %v3884_v50 = vld [vmem:[#allocation4 + $0x388] ss:$16 sps:$4 sm:$0xff]   ;;  %v3889_v51 = vld [vmem:[#allocation4 + $0x3a4] ss:$16 sps:$4 sm:$0xff]   ;;  %v157_v56 = vsub.s32 6, %v4458_v9 }
 0x14b   :  { %2132 = vmatprep.subr.bf16.mxu0 %v3835_v53  ;;  %2304 = vmatprep.subr.bf16.mxu1 %v3838_v54  ;;  %v3887_v53 = vld [vmem:[#allocation4 + $0x3a0] ss:$16 sps:$4 sm:$0xff]   ;;  %v3890_v54 = vld [vmem:[#allocation4 + $0x3a8] ss:$16 sps:$4 sm:$0xff]  }
 0x14c   :  { %2156 = vmatprep.mubr.bf16.mxu0 %v518_v59  ;;  %2328 = vmatprep.mubr.bf16.mxu1 %v518_v59  ;;  %v3895_v59 = vld [vmem:[#allocation4 + $0x3c4] ss:$16 sps:$4 sm:$0xff]   ;;  %v158_v62 = vrot.slane %v4466_v11, %v157_v56  ;;  %v3950_v56 = vld [vmem:[#allocation4 + $0x4e8] ss:$16 sps:$4 sm:$0xff]  }
 0x14e   :  { %2133 = vmatpush1.bf16.msra.mxu0 %v3833_v57  ;;  %2305 = vmatpush1.bf16.msra.mxu1 %v3836_v58  ;;  %v161_v58 = vsub.s32 7, %v4458_v9 }
 0x14f   :  { %2134 = vmatprep.subr.bf16.mxu0 %v3841_v60  ;;  %2306 = vmatprep.subr.bf16.mxu1 %v3844_v61  ;;  %v3898_v60 = vld [vmem:[#allocation4 + $0x3cc] ss:$16 sps:$4 sm:$0xff]  }
 0x150   :  { %v162_v63 = vrot.slane %v4466_v11, %v161_v58  ;;  %v3958_v58 = vld [vmem:[#allocation4 + $0x50c] ss:$16 sps:$4 sm:$0xff]  }
 0x152   :  { %2135 = vmatpush1.bf16.msra.mxu0 %v3839_v1  ;;  %2307 = vmatpush1.bf16.msra.mxu1 %v3842_v2  ;;  %v455_v13 = vpop.f32.mrb[8].mxu1 }
 0x153   :  { %2136 = vmatprep.subr.bf16.mxu0 %v3847_v3  ;;  %2308 = vmatprep.subr.bf16.mxu1 %v3850_v4  ;;  %v4496_v16 = vadd.f32 %v455_v13, %v150_v5  ;;  %v457_v17 = vpop.f32.mrb[9].mxu1  ;;  %v3893_v3 = vld [vmem:[#allocation4 + $0x3c0] ss:$16 sps:$4 sm:$0xff]   ;;  %v3896_v4 = vld [vmem:[#allocation4 + $0x3c8] ss:$16 sps:$4 sm:$0xff]  }
 0x154   :  { %v4498_v18 = vadd.f32 %v457_v17, %v154_v6  ;;  %v459_v19 = vpop.f32.mrb[10].mxu1  ;;  %v3904_v13 = vld [vmem:[#allocation4 + $0x3ec] ss:$16 sps:$4 sm:$0xff]   ;;  %v3899_v17 = vld [vmem:[#allocation4 + $0x3e0] ss:$16 sps:$4 sm:$0xff]  }
 0x155   :  { %v4500_v20 = vadd.f32 %v459_v19, %v150_v5  ;;  %v461_v21 = vpop.f32.mrb[11].mxu1  ;;  %v3902_v19 = vld [vmem:[#allocation4 + $0x3e8] ss:$16 sps:$4 sm:$0xff]  }
 0x156   :  { %2137 = vmatpush1.bf16.msra.mxu0 %v3845_v7  ;;  %2309 = vmatpush1.bf16.msra.mxu1 %v3848_v8  ;;  %v4502_v24 = vadd.f32 %v461_v21, %v154_v6  ;;  %v3901_v8 = vld [vmem:[#allocation4 + $0x3e4] ss:$16 sps:$4 sm:$0xff]  }
 0x157   :  { %2138 = vmatprep.subr.bf16.mxu0 %v3853_v14  ;;  %2310 = vmatprep.subr.bf16.mxu1 %v3856_v15  ;;  %v511_v28 = vpack.c.bf16 %v4500_v20, %v4496_v16  ;;  %v3907_v21 = vld [vmem:[#allocation4 + $0x404] ss:$16 sps:$4 sm:$0xff]   ;;  %v4018_v20 = vld [vmem:[#allocation4 + $0x64c] ss:$16 sps:$4 sm:$0xff]  }
 0x158   :  { %v512_v29 = vpack.c.bf16 %v4502_v24, %v4498_v18  ;;  %v3925_v18 = vld [vmem:[#allocation4 + $0x464] ss:$16 sps:$4 sm:$0xff]   ;;  %v3928_v24 = vld [vmem:[#allocation4 + $0x46c] ss:$16 sps:$4 sm:$0xff]  }
 0x159   :  { %v4015_v16 = vld [vmem:[#allocation4 + $0x644] ss:$16 sps:$4 sm:$0xff]  }
 0x15a   :  { %2139 = vmatpush1.bf16.msra.mxu0 %v3851_v22  ;;  %2311 = vmatpush1.bf16.msra.mxu1 %v3854_v23  ;;  %v3910_v22 = vld [vmem:[#allocation4 + $0x40c] ss:$16 sps:$4 sm:$0xff]   ;;  %v3905_v23 = vld [vmem:[#allocation4 + $0x400] ss:$16 sps:$4 sm:$0xff]  }
 0x15b   :  { %2140 = vmatprep.subr.bf16.mxu0 %v3859_v25  ;;  %2312 = vmatprep.subr.bf16.mxu1 %v3862_v26  ;;  %v3908_v25 = vld [vmem:[#allocation4 + $0x408] ss:$16 sps:$4 sm:$0xff]   ;;  %v517_v26 = vmax.bf16 %v4327_v0, %v509_v55  ;;  %v3917_v55 = vld [vmem:[#allocation4 + $0x440] ss:$16 sps:$4 sm:$0xff]  }
 0x15e   :  { %2141 = vmatpush1.bf16.msra.mxu0 %v3857_v30  ;;  %2313 = vmatpush1.bf16.msra.mxu1 %v3860_v31  ;;  %v3913_v30 = vld [vmem:[#allocation4 + $0x424] ss:$16 sps:$4 sm:$0xff]   ;;  %v3916_v31 = vld [vmem:[#allocation4 + $0x42c] ss:$16 sps:$4 sm:$0xff]  }
 0x15f   :  { %2142 = vmatprep.subr.bf16.mxu0 %v3865_v34  ;;  %2314 = vmatprep.subr.bf16.mxu1 %v3868_v35  ;;  %v520_v34 = vmax.bf16 %v4327_v0, %v512_v29  ;;  %v3911_v35 = vld [vmem:[#allocation4 + $0x420] ss:$16 sps:$4 sm:$0xff]  }
 0x160   :  { %v3923_v29 = vld [vmem:[#allocation4 + $0x460] ss:$16 sps:$4 sm:$0xff]  }
 0x162   :  { %2143 = vmatpush1.bf16.msra.mxu0 %v3863_v36  ;;  %2315 = vmatpush1.bf16.msra.mxu1 %v3866_v37  ;;  %v498_v57 = vpop.f32.mrb[12].mxu1  ;;  %v3914_v36 = vld [vmem:[#allocation4 + $0x428] ss:$16 sps:$4 sm:$0xff]  }
 0x163   :  { %2144 = vmatprep.subr.bf16.mxu0 %v3871_v38  ;;  %2316 = vmatprep.subr.bf16.mxu1 %v3874_v39  ;;  %v500_v61 = vpop.f32.mrb[13].mxu1  ;;  %v4512_v5 = vadd.f32 %v498_v57, %v158_v62  ;;  %v3920_v37 = vld [vmem:[#allocation4 + $0x448] ss:$16 sps:$4 sm:$0xff]   ;;  %v3931_v39 = vld [vmem:[#allocation4 + $0x484] ss:$16 sps:$4 sm:$0xff]  }
 0x164   :  { %v502_v1 = vpop.f32.mrb[14].mxu1  ;;  %v4514_v6 = vadd.f32 %v500_v61, %v162_v63  ;;  %v3926_v38 = vld [vmem:[#allocation4 + $0x468] ss:$16 sps:$4 sm:$0xff]   ;;  %v3955_v57 = vld [vmem:[#allocation4 + $0x504] ss:$16 sps:$4 sm:$0xff]  }
 0x165   :  { %v504_v2 = vpop.f32.mrb[15].mxu1  ;;  %v4516_v7 = vadd.f32 %v502_v1, %v158_v62  ;;  %v3961_v61 = vld [vmem:[#allocation4 + $0x524] ss:$16 sps:$4 sm:$0xff]   ;;  %v3964_v62 = vld [vmem:[#allocation4 + $0x52c] ss:$16 sps:$4 sm:$0xff]  }
 0x166   :  { %2145 = vmatpush1.bf16.msra.mxu0 %v3869_v40  ;;  %2317 = vmatpush1.bf16.msra.mxu1 %v3872_v41  ;;  %v4518_v14 = vadd.f32 %v504_v2, %v162_v63  ;;  %v3934_v40 = vld [vmem:[#allocation4 + $0x48c] ss:$16 sps:$4 sm:$0xff]   ;;  %v3929_v41 = vld [vmem:[#allocation4 + $0x480] ss:$16 sps:$4 sm:$0xff]   ;;  %v3962_v1 = vld [vmem:[#allocation4 + $0x528] ss:$16 sps:$4 sm:$0xff]  }
 0x167   :  { %2146 = vmatprep.subr.bf16.mxu0 %v3877_v42  ;;  %2318 = vmatprep.subr.bf16.mxu1 %v3880_v43  ;;  %v513_v11 = vpack.c.bf16 %v4516_v7, %v4512_v5  ;;  %v3932_v42 = vld [vmem:[#allocation4 + $0x488] ss:$16 sps:$4 sm:$0xff]   ;;  %v3937_v43 = vld [vmem:[#allocation4 + $0x4a4] ss:$16 sps:$4 sm:$0xff]   ;;  %v3959_v63 = vld [vmem:[#allocation4 + $0x520] ss:$16 sps:$4 sm:$0xff]  }
 0x168   :  { %v514_v15 = vpack.c.bf16 %v4518_v14, %v4514_v6  ;;  %v3967_v2 = vld [vmem:[#allocation4 + $0x544] ss:$16 sps:$4 sm:$0xff]   ;;  %v4024_v14 = vld [vmem:[#allocation4 + $0x66c] ss:$16 sps:$4 sm:$0xff]   ;;  %v4109_v5 = vld [vmem:[#allocation6 + $0x40] ss:$8 sps:$4 sm:$0xff]  }
 0x169   :  { %v4021_v6 = vld [vmem:[#allocation4 + $0x664] ss:$16 sps:$4 sm:$0xff]  }
 0x16a   :  { %2147 = vmatpush1.bf16.msra.mxu0 %v3875_v44  ;;  %2319 = vmatpush1.bf16.msra.mxu1 %v3878_v46  ;;  %v3940_v44 = vld [vmem:[#allocation4 + $0x4ac] ss:$16 sps:$4 sm:$0xff]   ;;  %v3935_v46 = vld [vmem:[#allocation4 + $0x4a0] ss:$16 sps:$4 sm:$0xff]  }
 0x16b   :  { %2148 = vmatprep.subr.bf16.mxu0 %v3883_v27  ;;  %2320 = vmatprep.subr.bf16.mxu1 %v3886_v47  ;;  %v3938_v27 = vld [vmem:[#allocation4 + $0x4a8] ss:$16 sps:$4 sm:$0xff]   ;;  %v3943_v47 = vld [vmem:[#allocation4 + $0x4c4] ss:$16 sps:$4 sm:$0xff]  }
 0x16c   :  { %v4114_v7 = vld [vmem:[#allocation6 + $0x54] ss:$8 sps:$4 sm:$0xff]  }
 0x16e   :  { %2149 = vmatpush1.bf16.msra.mxu0 %v3881_v49  ;;  %2321 = vmatpush1.bf16.msra.mxu1 %v3884_v50  ;;  %v3946_v49 = vld [vmem:[#allocation4 + $0x4cc] ss:$16 sps:$4 sm:$0xff]   ;;  %v3941_v50 = vld [vmem:[#allocation4 + $0x4c0] ss:$16 sps:$4 sm:$0xff]  }
 0x16f   :  { %2150 = vmatprep.subr.bf16.mxu0 %v3889_v51  ;;  %2322 = vmatprep.subr.bf16.mxu1 %v3892_v52  ;;  %v3944_v51 = vld [vmem:[#allocation4 + $0x4c8] ss:$16 sps:$4 sm:$0xff]   ;;  %v3949_v52 = vld [vmem:[#allocation4 + $0x4e4] ss:$16 sps:$4 sm:$0xff]  }
 0x172   :  { %2151 = vmatpush1.bf16.msra.mxu0 %v3887_v53  ;;  %2323 = vmatpush1.bf16.msra.mxu1 %v3890_v54  ;;  %v3952_v53 = vld [vmem:[#allocation4 + $0x4ec] ss:$16 sps:$4 sm:$0xff]   ;;  %v3947_v54 = vld [vmem:[#allocation4 + $0x4e0] ss:$16 sps:$4 sm:$0xff]  }
 0x173   :  { %2152 = vmatprep.subr.bf16.mxu0 %v3895_v59  ;;  %2324 = vmatprep.subr.bf16.mxu1 %v3898_v60  ;;  %v3953_v59 = vld [vmem:[#allocation4 + $0x500] ss:$16 sps:$4 sm:$0xff]   ;;  %v3956_v60 = vld [vmem:[#allocation4 + $0x508] ss:$16 sps:$4 sm:$0xff]  }
 0x176   :  { %2153 = vmatpush1.bf16.msra.mxu0 %v3893_v3  ;;  %2325 = vmatpush1.bf16.msra.mxu1 %v3896_v4  ;;  %v3970_v3 = vld [vmem:[#allocation4 + $0x54c] ss:$16 sps:$4 sm:$0xff]   ;;  %v3965_v4 = vld [vmem:[#allocation4 + $0x540] ss:$16 sps:$4 sm:$0xff]  }
 0x177   :  { %2154 = vmatprep.subr.bf16.mxu0 %v3901_v8  ;;  %2326 = vmatprep.subr.bf16.mxu1 %v3904_v13  ;;  %v3968_v8 = vld [vmem:[#allocation4 + $0x548] ss:$16 sps:$4 sm:$0xff]   ;;  %v3973_v13 = vld [vmem:[#allocation4 + $0x564] ss:$16 sps:$4 sm:$0xff]  }
 0x17a   :  { %2155 = vmatpush1.bf16.msra.mxu0 %v3899_v17  ;;  %2327 = vmatpush1.bf16.msra.mxu1 %v3902_v19  ;;  %v3976_v17 = vld [vmem:[#allocation4 + $0x56c] ss:$16 sps:$4 sm:$0xff]   ;;  %v3971_v19 = vld [vmem:[#allocation4 + $0x560] ss:$16 sps:$4 sm:$0xff]  }
 0x17b   :  { %2167 = vmatprep.subr.bf16.mxu0 %v3907_v21  ;;  %2339 = vmatprep.subr.bf16.mxu1 %v3910_v22  ;;  %v3974_v21 = vld [vmem:[#allocation4 + $0x568] ss:$16 sps:$4 sm:$0xff]   ;;  %v3979_v22 = vld [vmem:[#allocation4 + $0x584] ss:$16 sps:$4 sm:$0xff]  }
 0x17d   :  { %2157 = vmatmul.mubr.bf16.vlgmr.msra.gmra.mrb[0].mxu0 %v517_v26  ;;  %2329 = vmatmul.mubr.bf16.vlgmr.msra.gmra.mrb[16].mxu1 %v517_v26  ;;  %v3980_v26 = vld [vmem:[#allocation4 + $0x588] ss:$16 sps:$4 sm:$0xff]  }
 0x17e   :  { %2168 = vmatpush1.bf16.msra.mxu0 %v3905_v23  ;;  %2340 = vmatpush1.bf16.msra.mxu1 %v3908_v25  ;;  %v3982_v23 = vld [vmem:[#allocation4 + $0x58c] ss:$16 sps:$4 sm:$0xff]   ;;  %v3977_v25 = vld [vmem:[#allocation4 + $0x580] ss:$16 sps:$4 sm:$0xff]  }
 0x17f   :  { %2169 = vmatprep.subr.bf16.mxu0 %v3913_v30  ;;  %2341 = vmatprep.subr.bf16.mxu1 %v3916_v31  ;;  %v3985_v30 = vld [vmem:[#allocation4 + $0x5a4] ss:$16 sps:$4 sm:$0xff]   ;;  %v3988_v31 = vld [vmem:[#allocation4 + $0x5ac] ss:$16 sps:$4 sm:$0xff]  }
 0x180   :  { %2199 = vmatprep.mubr.bf16.mxu0 %v520_v34  ;;  %2371 = vmatprep.mubr.bf16.mxu1 %v520_v34  ;;  %v3983_v34 = vld [vmem:[#allocation4 + $0x5a0] ss:$16 sps:$4 sm:$0xff]  }
 0x182   :  { %2170 = vmatpush1.bf16.msra.mxu0 %v3911_v35  ;;  %2342 = vmatpush1.bf16.msra.mxu1 %v3914_v36  ;;  %v3986_v35 = vld [vmem:[#allocation4 + $0x5a8] ss:$16 sps:$4 sm:$0xff]   ;;  %v3991_v36 = vld [vmem:[#allocation4 + $0x5c4] ss:$16 sps:$4 sm:$0xff]  }
 0x183   :  { %2171 = vmatprep.subr.bf16.mxu0 %v3919_v45  ;;  %2343 = vmatprep.subr.bf16.mxu1 %v3922_v48  ;;  %v3994_v45 = vld [vmem:[#allocation4 + $0x5cc] ss:$16 sps:$4 sm:$0xff]   ;;  %v3989_v48 = vld [vmem:[#allocation4 + $0x5c0] ss:$16 sps:$4 sm:$0xff]  }
 0x186   :  { %2172 = vmatpush1.bf16.msra.mxu0 %v3917_v55  ;;  %2344 = vmatpush1.bf16.msra.mxu1 %v3920_v37  ;;  %v3992_v55 = vld [vmem:[#allocation4 + $0x5c8] ss:$16 sps:$4 sm:$0xff]   ;;  %v3997_v37 = vld [vmem:[#allocation4 + $0x5e4] ss:$16 sps:$4 sm:$0xff]  }
 0x187   :  { %2173 = vmatprep.subr.bf16.mxu0 %v3925_v18  ;;  %2345 = vmatprep.subr.bf16.mxu1 %v3928_v24  ;;  %v4000_v18 = vld [vmem:[#allocation4 + $0x5ec] ss:$16 sps:$4 sm:$0xff]   ;;  %v3995_v24 = vld [vmem:[#allocation4 + $0x5e0] ss:$16 sps:$4 sm:$0xff]  }
 0x18a   :  { %2174 = vmatpush1.bf16.msra.mxu0 %v3923_v29  ;;  %2346 = vmatpush1.bf16.msra.mxu1 %v3926_v38  ;;  %v3998_v29 = vld [vmem:[#allocation4 + $0x5e8] ss:$16 sps:$4 sm:$0xff]   ;;  %v4003_v38 = vld [vmem:[#allocation4 + $0x604] ss:$16 sps:$4 sm:$0xff]  }
 0x18b   :  { %2175 = vmatprep.subr.bf16.mxu0 %v3931_v39  ;;  %2347 = vmatprep.subr.bf16.mxu1 %v3934_v40  ;;  %v4006_v39 = vld [vmem:[#allocation4 + $0x60c] ss:$16 sps:$4 sm:$0xff]   ;;  %v4001_v40 = vld [vmem:[#allocation4 + $0x600] ss:$16 sps:$4 sm:$0xff]  }
 0x18e   :  { %2176 = vmatpush1.bf16.msra.mxu0 %v3929_v41  ;;  %2348 = vmatpush1.bf16.msra.mxu1 %v3932_v42  ;;  %v4004_v41 = vld [vmem:[#allocation4 + $0x608] ss:$16 sps:$4 sm:$0xff]   ;;  %v519_v42 = vmax.bf16 %v4327_v0, %v511_v28  ;;  %v4013_v28 = vld [vmem:[#allocation4 + $0x640] ss:$16 sps:$4 sm:$0xff]  }
 0x18f   :  { %2177 = vmatprep.subr.bf16.mxu0 %v3937_v43  ;;  %2349 = vmatprep.subr.bf16.mxu1 %v3940_v44  ;;  %v4009_v43 = vld [vmem:[#allocation4 + $0x624] ss:$16 sps:$4 sm:$0xff]   ;;  %v4012_v44 = vld [vmem:[#allocation4 + $0x62c] ss:$16 sps:$4 sm:$0xff]  }
 0x192   :  { %2178 = vmatpush1.bf16.msra.mxu0 %v3935_v46  ;;  %2350 = vmatpush1.bf16.msra.mxu1 %v3938_v27  ;;  %v522_v46 = vmax.bf16 %v4327_v0, %v514_v15  ;;  %v4007_v27 = vld [vmem:[#allocation4 + $0x620] ss:$16 sps:$4 sm:$0xff]  }
 0x193   :  { %2179 = vmatprep.subr.bf16.mxu0 %v3943_v47  ;;  %2351 = vmatprep.subr.bf16.mxu1 %v3946_v49  ;;  %v4010_v47 = vld [vmem:[#allocation4 + $0x628] ss:$16 sps:$4 sm:$0xff]   ;;  %v4019_v15 = vld [vmem:[#allocation4 + $0x660] ss:$16 sps:$4 sm:$0xff]  }
 0x194   :  { %v4016_v49 = vld [vmem:[#allocation4 + $0x648] ss:$16 sps:$4 sm:$0xff]  }
 0x196   :  { %2180 = vmatpush1.bf16.msra.mxu0 %v3941_v50  ;;  %2352 = vmatpush1.bf16.msra.mxu1 %v3944_v51  ;;  %v4022_v50 = vld [vmem:[#allocation4 + $0x668] ss:$16 sps:$4 sm:$0xff]   ;;  %v4027_v51 = vld [vmem:[#allocation4 + $0x684] ss:$16 sps:$4 sm:$0xff]  }
 0x197   :  { %2181 = vmatprep.subr.bf16.mxu0 %v3949_v52  ;;  %2353 = vmatprep.subr.bf16.mxu1 %v3952_v53  ;;  %v4030_v52 = vld [vmem:[#allocation4 + $0x68c] ss:$16 sps:$4 sm:$0xff]   ;;  %v4025_v53 = vld [vmem:[#allocation4 + $0x680] ss:$16 sps:$4 sm:$0xff]  }
 0x19a   :  { %2182 = vmatpush1.bf16.msra.mxu0 %v3947_v54  ;;  %2354 = vmatpush1.bf16.msra.mxu1 %v3950_v56  ;;  %v4028_v54 = vld [vmem:[#allocation4 + $0x688] ss:$16 sps:$4 sm:$0xff]   ;;  %v4033_v56 = vld [vmem:[#allocation4 + $0x6a4] ss:$16 sps:$4 sm:$0xff]  }
 0x19b   :  { %2183 = vmatprep.subr.bf16.mxu0 %v3955_v57  ;;  %2355 = vmatprep.subr.bf16.mxu1 %v3958_v58  ;;  %v4036_v57 = vld [vmem:[#allocation4 + $0x6ac] ss:$16 sps:$4 sm:$0xff]   ;;  %v4031_v58 = vld [vmem:[#allocation4 + $0x6a0] ss:$16 sps:$4 sm:$0xff]  }
 0x19e   :  { %2184 = vmatpush1.bf16.msra.mxu0 %v3953_v59  ;;  %2356 = vmatpush1.bf16.msra.mxu1 %v3956_v60  ;;  %v4034_v59 = vld [vmem:[#allocation4 + $0x6a8] ss:$16 sps:$4 sm:$0xff]   ;;  %v4039_v60 = vld [vmem:[#allocation4 + $0x6c4] ss:$16 sps:$4 sm:$0xff]  }
 0x19f   :  { %2185 = vmatprep.subr.bf16.mxu0 %v3961_v61  ;;  %2357 = vmatprep.subr.bf16.mxu1 %v3964_v62  ;;  %v4042_v61 = vld [vmem:[#allocation4 + $0x6cc] ss:$16 sps:$4 sm:$0xff]   ;;  %v4037_v62 = vld [vmem:[#allocation4 + $0x6c0] ss:$16 sps:$4 sm:$0xff]  }
 0x1a2   :  { %2186 = vmatpush1.bf16.msra.mxu0 %v3959_v63  ;;  %2358 = vmatpush1.bf16.msra.mxu1 %v3962_v1  ;;  %v4040_v63 = vld [vmem:[#allocation4 + $0x6c8] ss:$16 sps:$4 sm:$0xff]   ;;  %v4045_v1 = vld [vmem:[#allocation4 + $0x6e4] ss:$16 sps:$4 sm:$0xff]  }
 0x1a3   :  { %2187 = vmatprep.subr.bf16.mxu0 %v3967_v2  ;;  %2359 = vmatprep.subr.bf16.mxu1 %v3970_v3  ;;  %v4048_v2 = vld [vmem:[#allocation4 + $0x6ec] ss:$16 sps:$4 sm:$0xff]   ;;  %v4043_v3 = vld [vmem:[#allocation4 + $0x6e0] ss:$16 sps:$4 sm:$0xff]  }
 0x1a6   :  { %2188 = vmatpush1.bf16.msra.mxu0 %v3965_v4  ;;  %2360 = vmatpush1.bf16.msra.mxu1 %v3968_v8  ;;  %v4046_v4 = vld [vmem:[#allocation4 + $0x6e8] ss:$16 sps:$4 sm:$0xff]   ;;  %v4051_v8 = vld [vmem:[#allocation4 + $0x704] ss:$16 sps:$4 sm:$0xff]  }
 0x1a7   :  { %2189 = vmatprep.subr.bf16.mxu0 %v3973_v13  ;;  %2361 = vmatprep.subr.bf16.mxu1 %v3976_v17  ;;  %v4054_v13 = vld [vmem:[#allocation4 + $0x70c] ss:$16 sps:$4 sm:$0xff]   ;;  %v4049_v17 = vld [vmem:[#allocation4 + $0x700] ss:$16 sps:$4 sm:$0xff]  }
 0x1aa   :  { %2190 = vmatpush1.bf16.msra.mxu0 %v3971_v19  ;;  %2362 = vmatpush1.bf16.msra.mxu1 %v3974_v21  ;;  %v4052_v19 = vld [vmem:[#allocation4 + $0x708] ss:$16 sps:$4 sm:$0xff]   ;;  %v4057_v21 = vld [vmem:[#allocation4 + $0x724] ss:$16 sps:$4 sm:$0xff]  }
 0x1ab   :  { %2191 = vmatprep.subr.bf16.mxu0 %v3979_v22  ;;  %2363 = vmatprep.subr.bf16.mxu1 %v3982_v23  ;;  %v4060_v22 = vld [vmem:[#allocation4 + $0x72c] ss:$16 sps:$4 sm:$0xff]   ;;  %v4055_v23 = vld [vmem:[#allocation4 + $0x720] ss:$16 sps:$4 sm:$0xff]  }
 0x1ae   :  { %2192 = vmatpush1.bf16.msra.mxu0 %v3977_v25  ;;  %2364 = vmatpush1.bf16.msra.mxu1 %v3980_v26  ;;  %v4058_v25 = vld [vmem:[#allocation4 + $0x728] ss:$16 sps:$4 sm:$0xff]   ;;  %v4063_v26 = vld [vmem:[#allocation4 + $0x744] ss:$16 sps:$4 sm:$0xff]  }
 0x1af   :  { %2193 = vmatprep.subr.bf16.mxu0 %v3985_v30  ;;  %2365 = vmatprep.subr.bf16.mxu1 %v3988_v31  ;;  %v4066_v30 = vld [vmem:[#allocation4 + $0x74c] ss:$16 sps:$4 sm:$0xff]   ;;  %v4061_v31 = vld [vmem:[#allocation4 + $0x740] ss:$16 sps:$4 sm:$0xff]  }
 0x1b2   :  { %2194 = vmatpush1.bf16.msra.mxu0 %v3983_v34  ;;  %2366 = vmatpush1.bf16.msra.mxu1 %v3986_v35  ;;  %v4064_v34 = vld [vmem:[#allocation4 + $0x748] ss:$16 sps:$4 sm:$0xff]   ;;  %v4069_v35 = vld [vmem:[#allocation4 + $0x764] ss:$16 sps:$4 sm:$0xff]  }
 0x1b3   :  { %2195 = vmatprep.subr.bf16.mxu0 %v3991_v36  ;;  %2367 = vmatprep.subr.bf16.mxu1 %v3994_v45  ;;  %v4072_v36 = vld [vmem:[#allocation4 + $0x76c] ss:$16 sps:$4 sm:$0xff]   ;;  %v4067_v45 = vld [vmem:[#allocation4 + $0x760] ss:$16 sps:$4 sm:$0xff]  }
 0x1b6   :  { %2196 = vmatpush1.bf16.msra.mxu0 %v3989_v48  ;;  %2368 = vmatpush1.bf16.msra.mxu1 %v3992_v55  ;;  %v4070_v48 = vld [vmem:[#allocation4 + $0x768] ss:$16 sps:$4 sm:$0xff]   ;;  %v4075_v55 = vld [vmem:[#allocation4 + $0x784] ss:$16 sps:$4 sm:$0xff]  }
 0x1b7   :  { %2197 = vmatprep.subr.bf16.mxu0 %v3997_v37  ;;  %2369 = vmatprep.subr.bf16.mxu1 %v4000_v18  ;;  %v4078_v37 = vld [vmem:[#allocation4 + $0x78c] ss:$16 sps:$4 sm:$0xff]   ;;  %v4073_v18 = vld [vmem:[#allocation4 + $0x780] ss:$16 sps:$4 sm:$0xff]  }
 0x1ba   :  { %2198 = vmatpush1.bf16.msra.mxu0 %v3995_v24  ;;  %2370 = vmatpush1.bf16.msra.mxu1 %v3998_v29  ;;  %v4076_v24 = vld [vmem:[#allocation4 + $0x788] ss:$16 sps:$4 sm:$0xff]   ;;  %v4081_v29 = vld [vmem:[#allocation4 + $0x7a4] ss:$16 sps:$4 sm:$0xff]  }
 0x1bb   :  { %2210 = vmatprep.subr.bf16.mxu0 %v4003_v38  ;;  %2382 = vmatprep.subr.bf16.mxu1 %v4006_v39  ;;  %v4084_v38 = vld [vmem:[#allocation4 + $0x7ac] ss:$16 sps:$4 sm:$0xff]   ;;  %v4079_v39 = vld [vmem:[#allocation4 + $0x7a0] ss:$16 sps:$4 sm:$0xff]  }
 0x1bd   :  { %2200 = vmatmul.mubr.bf16.vlgmr.msra.gmra.mrb[0].mxu0 %v519_v42  ;;  %2372 = vmatmul.mubr.bf16.vlgmr.msra.gmra.mrb[16].mxu1 %v519_v42  ;;  %v4090_v42 = vld [vmem:[#allocation4 + $0x7cc] ss:$16 sps:$4 sm:$0xff]  }
 0x1be   :  { %2211 = vmatpush1.bf16.msra.mxu0 %v4001_v40  ;;  %2383 = vmatpush1.bf16.msra.mxu1 %v4004_v41  ;;  %v4082_v40 = vld [vmem:[#allocation4 + $0x7a8] ss:$16 sps:$4 sm:$0xff]   ;;  %v4087_v41 = vld [vmem:[#allocation4 + $0x7c4] ss:$16 sps:$4 sm:$0xff]  }
 0x1bf   :  { %2212 = vmatprep.subr.bf16.mxu0 %v4009_v43  ;;  %2384 = vmatprep.subr.bf16.mxu1 %v4012_v44  ;;  %v4085_v43 = vld [vmem:[#allocation4 + $0x7c0] ss:$16 sps:$4 sm:$0xff]   ;;  %v4088_v44 = vld [vmem:[#allocation4 + $0x7c8] ss:$16 sps:$4 sm:$0xff]  }
 0x1c0   :  { %2242 = vmatprep.mubr.bf16.mxu0 %v522_v46  ;;  %2414 = vmatprep.mubr.bf16.mxu1 %v522_v46  ;;  %v4093_v46 = vld [vmem:[#allocation4 + $0x7e4] ss:$16 sps:$4 sm:$0xff]  }
 0x1c2   :  { %2213 = vmatpush1.bf16.msra.mxu0 %v4007_v27  ;;  %2385 = vmatpush1.bf16.msra.mxu1 %v4010_v47  ;;  %v4096_v27 = vld [vmem:[#allocation4 + $0x7ec] ss:$16 sps:$4 sm:$0xff]   ;;  %v4091_v47 = vld [vmem:[#allocation4 + $0x7e0] ss:$16 sps:$4 sm:$0xff]  }
 0x1c3   :  { %2214 = vmatprep.subr.bf16.mxu0 %v4015_v16  ;;  %2386 = vmatprep.subr.bf16.mxu1 %v4018_v20  ;;  %v4094_v16 = vld [vmem:[#allocation4 + $0x7e8] ss:$16 sps:$4 sm:$0xff]   ;;  %v4099_v20 = vld [vmem:[#allocation6 + $0x4] ss:$8 sps:$4 sm:$0xff]  }
 0x1c6   :  { %2215 = vmatpush1.bf16.msra.mxu0 %v4013_v28  ;;  %2387 = vmatpush1.bf16.msra.mxu1 %v4016_v49  ;;  %v4097_v28 = vld [vmem:[#allocation6] ss:$8 sps:$4 sm:$0xff]   ;;  %v521_v49 = vmax.bf16 %v4327_v0, %v513_v11  ;;  %v4112_v11 = vld [vmem:[#allocation6 + $0x50] ss:$8 sps:$4 sm:$0xff]  }
 0x1c7   :  { %2216 = vmatprep.subr.bf16.mxu0 %v4021_v6  ;;  %2388 = vmatprep.subr.bf16.mxu1 %v4024_v14  ;;  %v4102_v6 = vld [vmem:[#allocation6 + $0x14] ss:$8 sps:$4 sm:$0xff]   ;;  %v4100_v14 = vld [vmem:[#allocation6 + $0x10] ss:$8 sps:$4 sm:$0xff]  }
 0x1ca   :  { %2217 = vmatpush1.bf16.msra.mxu0 %v4019_v15  ;;  %2389 = vmatpush1.bf16.msra.mxu1 %v4022_v50  ;;  %v4105_v15 = vld [vmem:[#allocation6 + $0x24] ss:$8 sps:$4 sm:$0xff]   ;;  %v4103_v50 = vld [vmem:[#allocation6 + $0x20] ss:$8 sps:$4 sm:$0xff]  }
 0x1cb   :  { %2218 = vmatprep.subr.bf16.mxu0 %v4027_v51  ;;  %2390 = vmatprep.subr.bf16.mxu1 %v4030_v52  ;;  %v4108_v51 = vld [vmem:[#allocation6 + $0x34] ss:$8 sps:$4 sm:$0xff]   ;;  %v4106_v52 = vld [vmem:[#allocation6 + $0x30] ss:$8 sps:$4 sm:$0xff]  }
 0x1ce   :  { %2219 = vmatpush1.bf16.msra.mxu0 %v4025_v53  ;;  %2391 = vmatpush1.bf16.msra.mxu1 %v4028_v54  ;;  %v4111_v53 = vld [vmem:[#allocation6 + $0x44] ss:$8 sps:$4 sm:$0xff]  }
 0x1cf   :  { %2220 = vmatprep.subr.bf16.mxu0 %v4033_v56  ;;  %2392 = vmatprep.subr.bf16.mxu1 %v4036_v57  ;;  %v4117_v54 = vld [vmem:[#allocation6 + $0x64] ss:$8 sps:$4 sm:$0xff]   ;;  %v4115_v56 = vld [vmem:[#allocation6 + $0x60] ss:$8 sps:$4 sm:$0xff]   ;;  %v4120_v57 = vld [vmem:[#allocation6 + $0x74] ss:$8 sps:$4 sm:$0xff]  }
 0x1d2   :  { %2221 = vmatpush1.bf16.msra.mxu0 %v4031_v58  ;;  %2393 = vmatpush1.bf16.msra.mxu1 %v4034_v59  ;;  %v4118_v58 = vld [vmem:[#allocation6 + $0x70] ss:$8 sps:$4 sm:$0xff]   ;;  %v4123_v59 = vld [vmem:[#allocation6 + $0x84] ss:$8 sps:$4 sm:$0xff]  }
 0x1d3   :  { %2222 = vmatprep.subr.bf16.mxu0 %v4039_v60  ;;  %2394 = vmatprep.subr.bf16.mxu1 %v4042_v61  ;;  %v4121_v60 = vld [vmem:[#allocation6 + $0x80] ss:$8 sps:$4 sm:$0xff]   ;;  %v4126_v61 = vld [vmem:[#allocation6 + $0x94] ss:$8 sps:$4 sm:$0xff]  }
 0x1d6   :  { %2223 = vmatpush1.bf16.msra.mxu0 %v4037_v62  ;;  %2395 = vmatpush1.bf16.msra.mxu1 %v4040_v63  ;;  %v4124_v62 = vld [vmem:[#allocation6 + $0x90] ss:$8 sps:$4 sm:$0xff]   ;;  %v4129_v63 = vld [vmem:[#allocation6 + $0xa4] ss:$8 sps:$4 sm:$0xff]  }
 0x1d7   :  { %2224 = vmatprep.subr.bf16.mxu0 %v4045_v1  ;;  %2396 = vmatprep.subr.bf16.mxu1 %v4048_v2  ;;  %v4127_v1 = vld [vmem:[#allocation6 + $0xa0] ss:$8 sps:$4 sm:$0xff]   ;;  %v4132_v2 = vld [vmem:[#allocation6 + $0xb4] ss:$8 sps:$4 sm:$0xff]  }
 0x1da   :  { %2225 = vmatpush1.bf16.msra.mxu0 %v4043_v3  ;;  %2397 = vmatpush1.bf16.msra.mxu1 %v4046_v4  ;;  %v4130_v3 = vld [vmem:[#allocation6 + $0xb0] ss:$8 sps:$4 sm:$0xff]   ;;  %v4135_v4 = vld [vmem:[#allocation6 + $0xc4] ss:$8 sps:$4 sm:$0xff]  }
 0x1db   :  { %2226 = vmatprep.subr.bf16.mxu0 %v4051_v8  ;;  %2398 = vmatprep.subr.bf16.mxu1 %v4054_v13  ;;  %v4133_v8 = vld [vmem:[#allocation6 + $0xc0] ss:$8 sps:$4 sm:$0xff]   ;;  %v4138_v13 = vld [vmem:[#allocation6 + $0xd4] ss:$8 sps:$4 sm:$0xff]  }
 0x1de   :  { %2227 = vmatpush1.bf16.msra.mxu0 %v4049_v17  ;;  %2399 = vmatpush1.bf16.msra.mxu1 %v4052_v19  ;;  %v4136_v17 = vld [vmem:[#allocation6 + $0xd0] ss:$8 sps:$4 sm:$0xff]   ;;  %v4141_v19 = vld [vmem:[#allocation6 + $0xe4] ss:$8 sps:$4 sm:$0xff]  }
 0x1df   :  { %2228 = vmatprep.subr.bf16.mxu0 %v4057_v21  ;;  %2400 = vmatprep.subr.bf16.mxu1 %v4060_v22  ;;  %v4139_v21 = vld [vmem:[#allocation6 + $0xe0] ss:$8 sps:$4 sm:$0xff]   ;;  %v4144_v22 = vld [vmem:[#allocation6 + $0xf4] ss:$8 sps:$4 sm:$0xff]  }
 0x1e2   :  { %2229 = vmatpush1.bf16.msra.mxu0 %v4055_v23  ;;  %2401 = vmatpush1.bf16.msra.mxu1 %v4058_v25  ;;  %v4142_v23 = vld [vmem:[#allocation6 + $0xf0] ss:$8 sps:$4 sm:$0xff]   ;;  %v4147_v25 = vld [vmem:[#allocation6 + $0x104] ss:$8 sps:$4 sm:$0xff]  }
 0x1e3   :  { %2230 = vmatprep.subr.bf16.mxu0 %v4063_v26  ;;  %2402 = vmatprep.subr.bf16.mxu1 %v4066_v30  ;;  %v4193_v26 = vld [vmem:[#allocation7 + $0x40] sm:$0xff]  }
 0x1e4   :  { %v4194_v30 = vld [vmem:[#allocation7] sm:$0xff]  }
 0x1e6   :  { %2231 = vmatpush1.bf16.msra.mxu0 %v4061_v31  ;;  %2403 = vmatpush1.bf16.msra.mxu1 %v4064_v34  ;;  %v4195_v31 = vld [vmem:[#allocation7 + $0x48] sm:$0xff]  }
 0x1e7   :  { %2232 = vmatprep.subr.bf16.mxu0 %v4069_v35  ;;  %2404 = vmatprep.subr.bf16.mxu1 %v4072_v36  ;;  %v4196_v34 = vld [vmem:[#allocation7 + $0x8] sm:$0xff]   ;;  %v4197_v35 = vld [vmem:[#allocation7 + $0x50] sm:$0xff]  }
 0x1e8   :  { %v4198_v36 = vld [vmem:[#allocation7 + $0x10] sm:$0xff]  }
 0x1ea   :  { %2233 = vmatpush1.bf16.msra.mxu0 %v4067_v45  ;;  %2405 = vmatpush1.bf16.msra.mxu1 %v4070_v48  ;;  %v4199_v45 = vld [vmem:[#allocation7 + $0x58] sm:$0xff]  }
 0x1eb   :  { %2234 = vmatprep.subr.bf16.mxu0 %v4075_v55  ;;  %2406 = vmatprep.subr.bf16.mxu1 %v4078_v37  ;;  %v4200_v48 = vld [vmem:[#allocation7 + $0x18] sm:$0xff]   ;;  %v4201_v55 = vld [vmem:[#allocation7 + $0x60] sm:$0xff]  }
 0x1ec   :  { %v4202_v37 = vld [vmem:[#allocation7 + $0x20] sm:$0xff]  }
 0x1ee   :  { %2235 = vmatpush1.bf16.msra.mxu0 %v4073_v18  ;;  %2407 = vmatpush1.bf16.msra.mxu1 %v4076_v24  ;;  %v4203_v18 = vld [vmem:[#allocation7 + $0x68] sm:$0xff]   ;;  %v779_v24 = vld [vmem:[%s4614_s4] sm:$0xf] }
 0x1ef   :  { %2236 = vmatprep.subr.bf16.mxu0 %v4081_v29  ;;  %2408 = vmatprep.subr.bf16.mxu1 %v4084_v38  ;;  %v784_v29 = vrot.slane %v779_v24, %v4461_v10  ;;  %v792_v38 = vrot.slane %v779_v24, %v141_v32 }
 0x1f2   :  { %2237 = vmatpush1.bf16.msra.mxu0 %v4079_v39  ;;  %2409 = vmatpush1.bf16.msra.mxu1 %v4082_v40 }
 0x1f3   :  { %2238 = vmatprep.subr.bf16.mxu0 %v4087_v41  ;;  %2410 = vmatprep.subr.bf16.mxu1 %v4090_v42  ;;  %v788_v41 = vrot.slane %v779_v24, %v4469_v12  ;;  %v796_v42 = vrot.slane %v779_v24, %v145_v33  ;;  %v4205_v24 = vld [vmem:[#allocation7 + $0x70] sm:$0xff]  }
 0x1f6   :  { %2239 = vmatpush1.bf16.msra.mxu0 %v4085_v43  ;;  %2411 = vmatpush1.bf16.msra.mxu1 %v4088_v44 }
 0x1f7   :  { %2240 = vmatprep.subr.bf16.mxu0 %v4093_v46  ;;  %2412 = vmatprep.subr.bf16.mxu1 %v4096_v27 }
 0x1fa   :  { %2241 = vmatpush1.bf16.msra.mxu0 %v4091_v47  ;;  %2413 = vmatpush1.bf16.msra.mxu1 %v4094_v16 }
 0x1fb   :  { %2829 = vmatprep.subr.bf16.mxu0 %v4099_v20  ;;  %3607 = vmatprep.subr.bf16.mxu1 %v4193_v26  ;;  %v4178_v26 = vld [vmem:[#allocation6 + $0x1b0] ss:$8 sps:$4 sm:$0xff]  }
 0x1fd   :  { %2243 = vmatmul.mubr.bf16.vlgmr.msra.gmra.mrb[0].mxu0 %v521_v49  ;;  %2415 = vmatmul.mubr.bf16.vlgmr.msra.gmra.mrb[16].mxu1 %v521_v49 }
 0x1fe   :  { %2830 = vmatpush1.bf16.msra.mxu0 %v4097_v28  ;;  %3608 = vmatpush3.bf16.msra.mxu1 %v4194_v30  ;;  %v4183_v30 = vld [vmem:[#allocation6 + $0x1c4] ss:$8 sps:$4 sm:$0xff]  }
 0x1ff   :  { %2831 = vmatprep.subr.bf16.mxu0 %v4102_v6  ;;  %3609 = vmatprep.subr.bf16.mxu1 %v4195_v31  ;;  %v4181_v31 = vld [vmem:[#allocation6 + $0x1c0] ss:$8 sps:$4 sm:$0xff]  }
 0x202   :  { %2832 = vmatpush1.bf16.msra.mxu0 %v4100_v14  ;;  %3610 = vmatpush3.bf16.msra.mxu1 %v4196_v34  ;;  %v4186_v34 = vld [vmem:[#allocation6 + $0x1d4] ss:$8 sps:$4 sm:$0xff]  }
 0x203   :  { %2833 = vmatprep.subr.bf16.mxu0 %v4105_v15  ;;  %3611 = vmatprep.subr.bf16.mxu1 %v4197_v35  ;;  %v4184_v35 = vld [vmem:[#allocation6 + $0x1d0] ss:$8 sps:$4 sm:$0xff]  }
 0x206   :  { %2834 = vmatpush1.bf16.msra.mxu0 %v4103_v50  ;;  %3612 = vmatpush3.bf16.msra.mxu1 %v4198_v36  ;;  %v4189_v36 = vld [vmem:[#allocation6 + $0x1e4] ss:$8 sps:$4 sm:$0xff]  }
 0x207   :  { %2835 = vmatprep.subr.bf16.mxu0 %v4108_v51  ;;  %3613 = vmatprep.subr.bf16.mxu1 %v4199_v45  ;;  %v4187_v45 = vld [vmem:[#allocation6 + $0x1e0] ss:$8 sps:$4 sm:$0xff]  }
 0x20a   :  { %2836 = vmatpush1.bf16.msra.mxu0 %v4106_v52  ;;  %3614 = vmatpush3.bf16.msra.mxu1 %v4200_v48  ;;  %v4192_v48 = vld [vmem:[#allocation6 + $0x1f4] ss:$8 sps:$4 sm:$0xff]  }
 0x20b   :  { %2837 = vmatprep.subr.bf16.mxu0 %v4111_v53  ;;  %3615 = vmatprep.subr.bf16.mxu1 %v4201_v55  ;;  %v4190_v55 = vld [vmem:[#allocation6 + $0x1f0] ss:$8 sps:$4 sm:$0xff]  }
 0x20e   :  { %2838 = vmatpush1.bf16.msra.mxu0 %v4109_v5  ;;  %3616 = vmatpush3.bf16.msra.mxu1 %v4202_v37  ;;  %v4145_v5 = vld [vmem:[#allocation6 + $0x100] ss:$8 sps:$4 sm:$0xff]  }
 0x20f   :  { %2839 = vmatprep.subr.bf16.mxu0 %v4114_v7  ;;  %3617 = vmatprep.subr.bf16.mxu1 %v4203_v18  ;;  %v4204_v18 = vld [vmem:[#allocation7 + $0x28] sm:$0xff]  }
 0x212   :  { %2840 = vmatpush1.bf16.msra.mxu0 %v4112_v11  ;;  %v4150_v11 = vld [vmem:[#allocation6 + $0x114] ss:$8 sps:$4 sm:$0xff]   ;;  %3618 = vmatpush3.bf16.msra.mxu1 %v4204_v18 }
 0x213   :  { %2841 = vmatprep.subr.bf16.mxu0 %v4117_v54  ;;  %3619 = vmatprep.subr.bf16.mxu1 %v4205_v24 }
 0x216   :  { %2842 = vmatpush1.bf16.msra.mxu0 %v4115_v56  ;;  %v4148_v56 = vld [vmem:[#allocation6 + $0x110] ss:$8 sps:$4 sm:$0xff]  }
 0x217   :  { %2843 = vmatprep.subr.bf16.mxu0 %v4120_v57  ;;  %v4153_v57 = vld [vmem:[#allocation6 + $0x124] ss:$8 sps:$4 sm:$0xff]  }
 0x21a   :  { %2844 = vmatpush1.bf16.msra.mxu0 %v4118_v58  ;;  %v4151_v58 = vld [vmem:[#allocation6 + $0x120] ss:$8 sps:$4 sm:$0xff]  }
 0x21b   :  { %2845 = vmatprep.subr.bf16.mxu0 %v4123_v59  ;;  %v4156_v59 = vld [vmem:[#allocation6 + $0x134] ss:$8 sps:$4 sm:$0xff]  }
 0x21e   :  { %2846 = vmatpush1.bf16.msra.mxu0 %v4121_v60  ;;  %v4154_v60 = vld [vmem:[#allocation6 + $0x130] ss:$8 sps:$4 sm:$0xff]  }
 0x21f   :  { %2847 = vmatprep.subr.bf16.mxu0 %v4126_v61  ;;  %v4159_v61 = vld [vmem:[#allocation6 + $0x144] ss:$8 sps:$4 sm:$0xff]  }
 0x222   :  { %2848 = vmatpush1.bf16.msra.mxu0 %v4124_v62  ;;  %v4157_v62 = vld [vmem:[#allocation6 + $0x140] ss:$8 sps:$4 sm:$0xff]  }
 0x223   :  { %2849 = vmatprep.subr.bf16.mxu0 %v4129_v63  ;;  %v4162_v63 = vld [vmem:[#allocation6 + $0x154] ss:$8 sps:$4 sm:$0xff]  }
 0x226   :  { %2850 = vmatpush1.bf16.msra.mxu0 %v4127_v1  ;;  %v4160_v1 = vld [vmem:[#allocation6 + $0x150] ss:$8 sps:$4 sm:$0xff]  }
 0x227   :  { %2851 = vmatprep.subr.bf16.mxu0 %v4132_v2  ;;  %v4165_v2 = vld [vmem:[#allocation6 + $0x164] ss:$8 sps:$4 sm:$0xff]  }
 0x22a   :  { %2852 = vmatpush1.bf16.msra.mxu0 %v4130_v3  ;;  %v4163_v3 = vld [vmem:[#allocation6 + $0x160] ss:$8 sps:$4 sm:$0xff]  }
 0x22b   :  { %2853 = vmatprep.subr.bf16.mxu0 %v4135_v4  ;;  %v4168_v4 = vld [vmem:[#allocation6 + $0x174] ss:$8 sps:$4 sm:$0xff]  }
 0x22e   :  { %2854 = vmatpush1.bf16.msra.mxu0 %v4133_v8  ;;  %v4166_v8 = vld [vmem:[#allocation6 + $0x170] ss:$8 sps:$4 sm:$0xff]  }
 0x22f   :  { %2855 = vmatprep.subr.bf16.mxu0 %v4138_v13  ;;  %v4171_v13 = vld [vmem:[#allocation6 + $0x184] ss:$8 sps:$4 sm:$0xff]  }
 0x232   :  { %2856 = vmatpush1.bf16.msra.mxu0 %v4136_v17  ;;  %v4169_v17 = vld [vmem:[#allocation6 + $0x180] ss:$8 sps:$4 sm:$0xff]  }
 0x233   :  { %2857 = vmatprep.subr.bf16.mxu0 %v4141_v19  ;;  %v4174_v19 = vld [vmem:[#allocation6 + $0x194] ss:$8 sps:$4 sm:$0xff]  }
 0x236   :  { %2858 = vmatpush1.bf16.msra.mxu0 %v4139_v21  ;;  %v4172_v21 = vld [vmem:[#allocation6 + $0x190] ss:$8 sps:$4 sm:$0xff]  }
 0x237   :  { %2859 = vmatprep.subr.bf16.mxu0 %v4144_v22  ;;  %v4177_v22 = vld [vmem:[#allocation6 + $0x1a4] ss:$8 sps:$4 sm:$0xff]  }
 0x23a   :  { %2860 = vmatpush1.bf16.msra.mxu0 %v4142_v23  ;;  %v4175_v23 = vld [vmem:[#allocation6 + $0x1a0] ss:$8 sps:$4 sm:$0xff]  }
 0x23b   :  { %2872 = vmatprep.subr.bf16.mxu0 %v4147_v25  ;;  %v4180_v25 = vld [vmem:[#allocation6 + $0x1b4] ss:$8 sps:$4 sm:$0xff]  }
 0x2d0   :  { %v2244_v39 = vpop.f32.mrb[0].mxu0  ;;  %v2416_v40 = vpop.f32.mrb[16].mxu1 }
 0x2d1   :  { %v2246_v43 = vpop.f32.mrb[1].mxu0  ;;  %v2418_v44 = vpop.f32.mrb[17].mxu1  ;;  %v3658_v47 = vadd.f32 %v2244_v39, %v784_v29  ;;  %v4553_v16 = vadd.f32 %v2416_v40, %v792_v38  ;;  %v4208_v39 = vld [vmem:[#allocation7 + $0x38] sm:$0xff]   ;;  %v4328_v40 = vmov 0.0  }
 0x2d2   :  { %v2248_v46 = vpop.f32.mrb[2].mxu0  ;;  %v2420_v27 = vpop.f32.mrb[18].mxu1  ;;  %v3659_v32 = vadd.f32 %v2246_v43, %v788_v41  ;;  %v3663_v14 = vadd.f32 %v2418_v44, %v796_v42 }
 0x2d3   :  { %v3660_v20 = vadd.f32 %v2248_v46, %v784_v29  ;;  %v4555_v28 = vadd.f32 %v2420_v27, %v792_v38  ;;  %v2250_v49 = vpop.f32.mrb[3].mxu0  ;;  %v2422_v6 = vpop.f32.mrb[19].mxu1  ;;  %v4206_v29 = vld [vmem:[#allocation7 + $0x30] sm:$0xff]   ;;  %v4207_v38 = vld [vmem:[#allocation7 + $0x78] sm:$0xff]  }
 0x2d4   :  { %v3661_v15 = vadd.f32 %v2250_v49, %v788_v41  ;;  %v3665_v50 = vadd.f32 %v2422_v6, %v796_v42  ;;  %3620 = vmatpush3.bf16.msra.mxu1 %v4206_v29  ;;  %v2497_v41 = vld [vmem:[%s4616_s6] sm:$0x3] }
 0x2d5   :  { %v2425_v51 = vpack.c.bf16 %v3660_v20, %v3658_v47  ;;  %v2427_v9 = vpack.c.bf16 %v4555_v28, %v4553_v16  ;;  %3621 = vmatprep.subr.bf16.mxu1 %v4207_v38  ;;  %v2502_v42 = vrot.slane %v2497_v41, %v4461_v10  ;;  %v2506_v44 = vrot.slane %v2497_v41, %v4469_v12  ;;  %v4210_v12 = vld [vmem:[%s4619_s9 + $0x8] sm:$0xff]  }
 0x2d6   :  { %v2426_v33 = vpack.c.bf16 %v3661_v15, %v3659_v32  ;;  %v2428_v52 = vpack.c.bf16 %v3665_v50, %v3663_v14  ;;  %v4209_v15 = vld [vmem:[%s4619_s9] sm:$0xff]   ;;  %v4211_v50 = vld [vmem:[%s4619_s9 + $0x10] sm:$0xff]  }
 0x2d7   :  { %v2429_v7 = vmax.bf16 %v4327_v0, %v2425_v51  ;;  %v2431_v37 = vmax.bf16 %v4327_v0, %v2427_v9  ;;  %v4212_v51 = vld [vmem:[%s4619_s9 + $0x18] sm:$0xff]   ;;  %v4213_v9 = vld [vmem:[%s4619_s9 + $0x20] sm:$0xff]  }
 0x2d8   :  { %v2430_v53 = vmax.bf16 %v4327_v0, %v2426_v33  ;;  %v2432_v54 = vmax.bf16 %v4327_v0, %v2428_v52  ;;  %3622 = vmatpush3.bf16.msra.mxu1 %v4208_v39  ;;  %v4214_v33 = vld [vmem:[%s4619_s9 + $0x28] sm:$0xff]   ;;  %v4215_v52 = vld [vmem:[%s4619_s9 + $0x30] sm:$0xff]  }
 0x2d9   :  { %3638 = vmatprep.subr.bf16.mxu1 %v4328_v40 }
 0x2da   :  { %2861 = vmatprep.mubr.bf16.mxu0 %v2430_v53  ;;  %v4216_v53 = vld [vmem:[%s4619_s9 + $0x38] sm:$0xff]  }
 0x2db   :  { %2862 = vmatmul.mubr.bf16.vlgmr.msra.gmra.mrb[4].mxu0 %v2429_v7 }
 0x2dc   :  { %2873 = vmatpush1.bf16.msra.mxu0 %v4145_v5  ;;  %2904 = vmatprep.mubr.bf16.mxu0 %v2432_v54 }
 0x2dd   :  { %2874 = vmatprep.subr.bf16.mxu0 %v4150_v11 }
 0x2e0   :  { %2875 = vmatpush1.bf16.msra.mxu0 %v4148_v56  ;;  %v3581_v56 = vld [vmem:[%s4618_s8] ss:$0 sm:$0xff] }
 0x2e1   :  { %2876 = vmatprep.subr.bf16.mxu0 %v4153_v57 }
 0x2e4   :  { %2877 = vmatpush1.bf16.msra.mxu0 %v4151_v58 }
 0x2e5   :  { %2878 = vmatprep.subr.bf16.mxu0 %v4156_v59 }
 0x2e8   :  { %2879 = vmatpush1.bf16.msra.mxu0 %v4154_v60 }
 0x2e9   :  { %2880 = vmatprep.subr.bf16.mxu0 %v4159_v61 }
 0x2ec   :  { %2881 = vmatpush1.bf16.msra.mxu0 %v4157_v62 }
 0x2ed   :  { %2882 = vmatprep.subr.bf16.mxu0 %v4162_v63  ;;  %v3598_v63 = vld [vmem:[%s4620_s10] ss:$0 sm:$0xff] }
 0x2f0   :  { %2883 = vmatpush1.bf16.msra.mxu0 %v4160_v1 }
 0x2f1   :  { %2884 = vmatprep.subr.bf16.mxu0 %v4165_v2 }
 0x2f4   :  { %2885 = vmatpush1.bf16.msra.mxu0 %v4163_v3 }
 0x2f5   :  { %2886 = vmatprep.subr.bf16.mxu0 %v4168_v4 }
 0x2f8   :  { %2887 = vmatpush1.bf16.msra.mxu0 %v4166_v8 }
 0x2f9   :  { %2888 = vmatprep.subr.bf16.mxu0 %v4171_v13 }
 0x2fc   :  { %2889 = vmatpush1.bf16.msra.mxu0 %v4169_v17 }
 0x2fd   :  { %2890 = vmatprep.subr.bf16.mxu0 %v4174_v19 }
 0x300   :  { %2891 = vmatpush1.bf16.msra.mxu0 %v4172_v21 }
 0x301   :  { %2892 = vmatprep.subr.bf16.mxu0 %v4177_v22 }
 0x304   :  { %2893 = vmatpush1.bf16.msra.mxu0 %v4175_v23 }
 0x305   :  { %2894 = vmatprep.subr.bf16.mxu0 %v4180_v25 }
 0x308   :  { %2895 = vmatpush1.bf16.msra.mxu0 %v4178_v26 }
 0x309   :  { %2896 = vmatprep.subr.bf16.mxu0 %v4183_v30 }
 0x30c   :  { %2897 = vmatpush1.bf16.msra.mxu0 %v4181_v31 }
 0x30d   :  { %2898 = vmatprep.subr.bf16.mxu0 %v4186_v34 }
 0x310   :  { %2899 = vmatpush1.bf16.msra.mxu0 %v4184_v35 }
 0x311   :  { %2900 = vmatprep.subr.bf16.mxu0 %v4189_v36 }
 0x314   :  { %2901 = vmatpush1.bf16.msra.mxu0 %v4187_v45 }
 0x315   :  { %2902 = vmatprep.subr.bf16.mxu0 %v4192_v48 }
 0x318   :  { %2903 = vmatpush1.bf16.msra.mxu0 %v4190_v55 }
 0x31b   :  { %2905 = vmatmul.mubr.bf16.vlgmr.msra.gmra.mrb[4].mxu0 %v2431_v37 }
 0x3ee   :  { %v2906_v43 = vpop.f32.mrb[4].mxu0 }
 0x3ef   :  { %v2908_v46 = vpop.f32.mrb[5].mxu0  ;;  %v3666_v47 = vadd.f32 %v2906_v43, %v2502_v42 }
 0x3f0   :  { %v2910_v27 = vpop.f32.mrb[6].mxu0  ;;  %v3667_v28 = vadd.f32 %v2908_v46, %v2506_v44 }
 0x3f1   :  { %v3668_v16 = vadd.f32 %v2910_v27, %v2502_v42  ;;  %v2912_v20 = vpop.f32.mrb[7].mxu0 }
 0x3f2   :  { %v3669_v49 = vadd.f32 %v2912_v20, %v2506_v44 }
 0x3f3   :  { %v2915_v6 = vpack.c.bf16 %v3668_v16, %v3666_v47 }
 0x3f4   :  { %v2916_v32 = vpack.c.bf16 %v3669_v49, %v3667_v28 }
 0x3f5   :  { %v2917_v10 = vmax.bf16 %v4327_v0, %v2915_v6 }
 0x3f6   :  { %v2918_v14 = vmax.bf16 %v4327_v0, %v2916_v32 }
 0x3f8   :  { %3086 = vmatprep.mubr.bf16.mxu1 %v2918_v14 }
 0x3f9   :  { %3087 = vmatmul.mubr.bf16.vlgmr.msra.gmra.mrb[20].mxu1 %v2917_v10 }
 0x3fa   :  { %3639 = vmatpush3.bf16.msra.mxu1 %v4209_v15  ;;  %3654 = vmatprep.mubr.msk.bf16.mxu1 %vm4329_vm1, %v4328_v40 }
 0x3fb   :  { %3640 = vmatprep.subr.bf16.mxu1 %v4328_v40 }
 0x3fe   :  { %3641 = vmatpush3.bf16.msra.mxu1 %v4210_v12 }
 0x3ff   :  { %3642 = vmatprep.subr.bf16.mxu1 %v4328_v40 }
 0x402   :  { %3643 = vmatpush3.bf16.msra.mxu1 %v4211_v50 }
 0x403   :  { %3644 = vmatprep.subr.bf16.mxu1 %v4328_v40 }
 0x406   :  { %3645 = vmatpush3.bf16.msra.mxu1 %v4212_v51 }
 0x407   :  { %3646 = vmatprep.subr.bf16.mxu1 %v4328_v40 }
 0x40a   :  { %3647 = vmatpush3.bf16.msra.mxu1 %v4213_v9 }
 0x40b   :  { %3648 = vmatprep.subr.bf16.mxu1 %v4328_v40 }
 0x40e   :  { %3649 = vmatpush3.bf16.msra.mxu1 %v4214_v33 }
 0x40f   :  { %3650 = vmatprep.subr.bf16.mxu1 %v4328_v40 }
 0x412   :  { %3651 = vmatpush3.bf16.msra.mxu1 %v4215_v52 }
 0x413   :  { %3652 = vmatprep.subr.bf16.mxu1 %v4328_v40 }
 0x416   :  { %3653 = vmatpush3.bf16.msra.mxu1 %v4216_v53 }
 0x4cc   :  { %v3623_v5 = vpop.f32.mrb[20].mxu1 }
 0x4cd   :  { %v3624_v7 = vpop.f32.mrb[21].mxu1 }
 0x4ce   :  { %v3625_v11 = vadd.f32 %v3624_v7, %v3623_v5  ;;  %v3626_v54 = vpop.f32.mrb[22].mxu1 }
 0x4cf   :  { %v3627_v57 = vpop.f32.mrb[23].mxu1 }
 0x4d0   :  { %v3628_v58 = vadd.f32 %v3627_v57, %v3626_v54  ;;  %v3089_v59 = vadd.f32 %v3625_v11, %v3581_v56 }
 0x4d2   :  { %v3092_v60 = vadd.f32 %v3628_v58, %v3581_v56 }
 0x4d4   :  { %v3095_v61 = vpack.c.bf16 %v3092_v60, %v3089_v59 }
 0x4d6   :  { %v3096_v62 = vmax.bf16 %v4327_v0, %v3095_v61 }
 0x4d8   :  { %3655 = vmatmul.mubr.bf16.vlgmr.msra.gmra.mrb[24].mxu1 %v3096_v62 }
 0x5ab   :  { %v3202_v1 = vpop.f32.mrb[24].mxu1 }
 0x5ac   :  { %v3203_v2 = vadd.f32 %v3598_v63, %v3202_v1  ;;  %v3656_v3 = vpop.f32.mrb[25].mxu1 }
 0x5ad   :  { %v3205_v4 = vpop.f32.mrb[26].mxu1 }
 0x5ae   :  { %4217 = vtanh.f32 %v3203_v2  ;;  %v3206_v8 = vadd.f32 %v3598_v63, %v3205_v4  ;;  %v3657_v13 = vpop.f32.mrb[27].mxu1 }
 0x5b0   :  { %4219 = vtanh.f32 %v3206_v8 }
 0x5b8   :  { %v4218_v17 = vpop.eup %4217 }
 0x5b9   :  { %v3211_v19 = vadd.f32 1.0, %v4218_v17 }
 0x5ba   :  { %v4220_v21 = vpop.eup %4219 }
 0x5bb   :  { %v3213_v22 = vadd.f32 -1.0, %v3211_v19  ;;  %v3212_v23 = vadd.f32 1.0, %v4220_v21 }
 0x5bd   :  { %3216 = vst.msk [vmem:[%s4621_s11] sm:$0xff] %vm3215_vm2, %v3213_v22  ;;  %v3214_v0 = vadd.f32 -1.0, %v3212_v23 }
 0x5bf   :  { %3217 = vst.msk [vmem:[%s4621_s11 + $0x8] sm:$0xff] %vm3215_vm2, %v3214_v0 }
 0x5c0   :  { %3222 = vsyncpa [#allocation3], 1 }
 0x5c1   :  { %3223 = vsyncpa [#allocation5], 1 }
 0x5c2   :  { %3224 = vsyncpa [#allocation8], 1 }

</bundles_post_ra>
